<compile_context>
chip_gen: v7x
topology: tpu7x:2x2x1
jax: 0.10.0
libtpu: 0.0.40
codegen_flags: <defaults>
</compile_context>

<pallas_src>
import functools
import math

import jax
import jax.numpy as jnp
from jax import lax
from jax.experimental import pallas as pl
from jax.experimental.pallas import tpu as pltpu


# ----------------------------- linear projection -----------------------------

def _linear_kernel(x_ref, w_ref, b_ref, o_ref):
    # x: (TM, Din), w: (Din, Dout) (already transposed), b: (1, Dout)
    o_ref[...] = (jnp.dot(x_ref[...], w_ref[...],
                          preferred_element_type=jnp.float32) + b_ref[...])


def linear(x2d, w_t, bias, *, tile_m=512):
    """y = x @ w_t + bias with w_t pre-transposed to (Din, Dout); row-tiled."""
    M, Din = x2d.shape
    Dout = w_t.shape[1]
    tm = M if M <= tile_m else tile_m
    return pl.pallas_call(
        _linear_kernel,
        out_shape=jax.ShapeDtypeStruct((M, Dout), jnp.float32),
        grid=(pl.cdiv(M, tm),),
        in_specs=[pl.BlockSpec((tm, Din), lambda i: (i, 0)),
                  pl.BlockSpec((Din, Dout), lambda i: (0, 0)),
                  pl.BlockSpec((1, Dout), lambda i: (0, 0))],
        out_specs=pl.BlockSpec((tm, Dout), lambda i: (i, 0)),
        compiler_params=pltpu.CompilerParams(
            dimension_semantics=("parallel",),
            vmem_limit_bytes=48 * 1024 * 1024),
    )(x2d.astype(jnp.float32), w_t, bias.reshape(1, Dout))


# ------------------------- strided rel-pos attention --------------------------

def _strided_relpos_attn_kernel(q_ref, k_ref, v_ref, e_ref, uk_ref, ve_ref,
                                out_ref, attw_ref, *, num_heads, stride,
                                num_q_tiles):
    # q_ref:   (1, tq, D)      strided, projected, pre-scaled queries
    # k_ref:   (1, T,  D)      projected keys
    # v_ref:   (1, T,  D)      projected values
    # e_ref:   (rel_w, D)      projected rel-pos encodings, zero-padded rows
    # uk_ref:  (1, H, T)  f32  (u_h / sqrt(dh)) . K_h^T  rank-1 bias rows
    # ve_ref:  (H, rel_w) f32  (v_h / sqrt(dh)) . E_h^T  rank-1 bias rows
    # out_ref: (1, tq, D) f32
    # attw_ref:(1, H, tq, T)
    H, S = num_heads, stride
    tq, D = q_ref.shape[1], q_ref.shape[2]
    T = k_ref.shape[1]
    rel_w = e_ref.shape[0]
    dh = D // H

    q = q_ref[0]                                    # (tq, D)
    k = k_ref[0]                                    # (T, D)
    v = v_ref[0]                                    # (T, D)
    # E first so that both result slices below start at 128-aligned lanes.
    ek = jnp.concatenate([e_ref[...], k], axis=0)   # (rel_w + T, D)

    # rel->abs skew:  se[i, j] = mrel[i, (T-1) + j - (i0 + i)*S]
    # implemented as one lane rotation with per-sublane stride S (np.roll
    # semantics: row i rotated by shift + S*i).  Source lanes stay inside
    # [S-1, 2T-2] so the zero-padded E columns are never read.
    if num_q_tiles == 1:
        shift = rel_w - (T - 1)                     # static
    else:
        # NOTE: rotation amounts stay < rel_w for stride >= 2 (strided module).
        shift = rel_w - (T - 1) + pl.program_id(1) * (tq * S)

    outs = []
    for h in range(H):                              # H is small & static
        lo, hi = h * dh, (h + 1) * dh
        # single merged MXU push per head: q_h @ [E_h ; K_h]^T -> (tq, rel_w+T)
        s_all = lax.dot_general(q[:, lo:hi], ek[:, lo:hi],
                                (((1,), (1,)), ((), ())),
                                preferred_element_type=jnp.float32)
        mrel = s_all[:, :rel_w] + ve_ref[h:h + 1, :]          # (tq, rel_w)
        sk = s_all[:, rel_w:] + uk_ref[0, h:h + 1, :]         # (tq, T)

        se = pltpu.roll(mrel, shift, axis=1, stride=S, stride_axis=0)[:, :T]
        scores = sk + se

        mx = jnp.max(scores, axis=-1, keepdims=True)
        ex = jnp.exp(scores - mx)
        att = ex * pl.reciprocal(jnp.sum(ex, axis=-1, keepdims=True),
                                 approx=True)
        attw_ref[0, h] = att.astype(attw_ref.dtype)
        outs.append(jnp.dot(att.astype(v.dtype), v[:, lo:hi],
                            preferred_element_type=jnp.float32))

    # one lane-dense full-width store instead of H partial-lane stores
    out_ref[0] = jnp.concatenate(outs, axis=-1).astype(out_ref.dtype)


def strided_attention(q, k, v, e_pad, uk, ve, *, num_heads, stride,
                      attw_dtype=jnp.float32, q_tile=256):
    # q: (B, Tq, D), k/v: (B, T, D), e_pad: (rel_w, D), uk: (B,H,T), ve: (H,rel_w)
    B, Tq, D = q.shape
    T = k.shape[1]
    rel_w = e_pad.shape[0]
    tq = q_tile if (Tq > q_tile and Tq % q_tile == 0) else Tq
    n_qt = Tq // tq

    kernel = functools.partial(_strided_relpos_attn_kernel,
                               num_heads=num_heads, stride=stride,
                               num_q_tiles=n_qt)
    # TODO(synk): for very long T, K/V would additionally need flash-style
    # key tiling instead of a fully resident (T, D) block per step.
    out, attw = pl.pallas_call(
        kernel,
        out_shape=(jax.ShapeDtypeStruct((B, Tq, D), jnp.float32),
                   jax.ShapeDtypeStruct((B, num_heads, Tq, T), attw_dtype)),
        grid=(B, n_qt),
        in_specs=[pl.BlockSpec((1, tq, D), lambda b, t: (b, t, 0)),
                  pl.BlockSpec((1, T, D), lambda b, t: (b, 0, 0)),
                  pl.BlockSpec((1, T, D), lambda b, t: (b, 0, 0)),
                  pl.BlockSpec((rel_w, D), lambda b, t: (0, 0)),
                  pl.BlockSpec((1, num_heads, T), lambda b, t: (b, 0, 0)),
                  pl.BlockSpec((num_heads, rel_w), lambda b, t: (0, 0))],
        out_specs=(pl.BlockSpec((1, tq, D), lambda b, t: (b, t, 0)),
                   pl.BlockSpec((1, num_heads, tq, T),
                                lambda b, t: (b, 0, t, 0))),
        compiler_params=pltpu.CompilerParams(
            dimension_semantics=("parallel", "parallel"),
            vmem_limit_bytes=48 * 1024 * 1024),
    )(q, k, v, e_pad, uk, ve)
    return out, attw


# ------------------------------- glue (JAX) ----------------------------------

def rel_pos_encoding(max_len, dim_model, seq_len):
    """RelativeSinusoidalPositionalEncoding (non-causal), sliced for seq_len."""
    pos_left = jnp.arange(max_len - 1, 0, -1, dtype=jnp.float32)
    pos_right = jnp.arange(0, -max_len, -1, dtype=jnp.float32)
    pos = jnp.concatenate([pos_left, pos_right])[:, None]
    i = jnp.arange(0, dim_model // 2, dtype=jnp.float32)[None, :]
    angles = pos / (10000.0 ** (2.0 * i / dim_model))
    pe = jnp.zeros((2 * max_len - 1, dim_model), jnp.float32)
    pe = pe.at[:, 0::2].set(jnp.sin(angles))
    pe = pe.at[:, 1::2].set(jnp.cos(angles))
    return pe[max_len - seq_len:max_len - 1 + seq_len]     # (2*seq_len-1, D)


def init_params(key, dim_model):
    ks = jax.random.split(key, 12)

    def lin(k1, k2):
        w = jax.random.normal(k1, (dim_model, dim_model), jnp.float32) / math.sqrt(dim_model)
        b = jax.random.normal(k2, (dim_model,), jnp.float32) * 0.01
        return w, b

    Wq, bq = lin(ks[0], ks[1])
    Wk, bk = lin(ks[2], ks[3])
    Wv, bv = lin(ks[4], ks[5])
    Wo, bo = lin(ks[6], ks[7])
    Wp, bp = lin(ks[8], ks[9])
    u = jax.random.normal(ks[10], (dim_model,), jnp.float32) * 0.1
    v = jax.random.normal(ks[11], (dim_model,), jnp.float32) * 0.1
    return dict(Wq=Wq, bq=bq, Wk=Wk, bk=bk, Wv=Wv, bv=bv,
                Wo=Wo, bo=bo, Wp=Wp, bp=bp, u=u, v=v)


def make_device_params(params, num_heads):
    """Pre-transpose weights, fuse Wk|Wv, fold 1/sqrt(dh) into Wq/bq/u/v (once,
    outside jit) so no per-call HBM transposes or per-step score scaling."""
    D = params['Wq'].shape[0]
    inv = 1.0 / math.sqrt(D // num_heads)
    return dict(
        Wq_t=params['Wq'].T * inv, bq=params['bq'] * inv,
        Wk_t=params['Wk'].T, bk=params['bk'],
        Wv_t=params['Wv'].T, bv=params['bv'],
        Wkv_t=jnp.concatenate([params['Wk'].T, params['Wv'].T], axis=1),
        bkv=jnp.concatenate([params['bk'], params['bv']]),
        Wo_t=params['Wo'].T, bo=params['bo'],
        Wp_t=params['Wp'].T, bp=params['bp'],
        u_s=params['u'] * inv, v_s=params['v'] * inv,
    )


def strided_relpos_mhsa(query, key, value, dparams, *, num_heads, stride,
                        max_pos_encoding, compute_dtype=jnp.float32,
                        attw_dtype=jnp.float32, q_tile=256):
    """Forward pass of StridedRelPosMultiHeadSelfAttention (causal=False)."""
    B, T, D = query.shape
    H, S = num_heads, stride
    dh = D // H
    # TODO(synk): the pad() path for T % stride != 0, the optional `mask` branch
    # and the `hidden` (decoding cache concat) branch are not implemented.
    assert T % S == 0
    Tq = T // S

    # K/V projections; fused into a single pallas_call for self-attention
    if key is value:
        kv = linear(key.reshape(B * T, D), dparams['Wkv_t'], dparams['bkv'])
        k = kv[:, :D].reshape(B, T, D)
        v = kv[:, D:].reshape(B, T, D)
    else:
        k = linear(key.reshape(B * T, D), dparams['Wk_t'], dparams['bk']).reshape(B, T, D)
        v = linear(value.reshape(B * T, D), dparams['Wv_t'], dparams['bv']).reshape(B, T, D)

    # query_layer commutes with the row stride (pad() is a no-op here): only
    # project the strided query rows (1/sqrt(dh) already folded into Wq/bq).
    q = linear(query[:, ::S].reshape(B * Tq, D),
               dparams['Wq_t'], dparams['bq']).reshape(B, Tq, D)

    # relative positional encodings, projected once (NOT broadcast over batch),
    # zero-padded on the row axis to a 128-multiple so the in-kernel strided
    # lane roll operates on an aligned width.
    pe = rel_pos_encoding(max_pos_encoding, D, seq_len=S * Tq)      # (2T-1, D)
    E = linear(pe, dparams['Wp_t'], dparams['bp'])                  # (2T-1, D)
    rel_w = ((2 * T - 1 + 127) // 128) * 128
    E_pad = jnp.pad(E, ((0, rel_w - (2 * T - 1)), (0, 0)))

    # rank-1 bias rows for the merged score matmul:
    #   uk[b,h,:] = (u_h/sqrt(dh)) . K_h^T   (per batch, cheap einsum)
    #   ve[h,:]   = (v_h/sqrt(dh)) . E_h^T   (batch independent)
    uk = jnp.einsum('bthd,hd->bht', k.reshape(B, T, H, dh),
                    dparams['u_s'].reshape(H, dh))
    ve = jnp.einsum('rhd,hd->hr', E_pad.reshape(rel_w, H, dh),
                    dparams['v_s'].reshape(H, dh))

    out, att_w = strided_attention(
        q.astype(compute_dtype), k.astype(compute_dtype),
        v.astype(compute_dtype), E_pad.astype(compute_dtype), uk, ve,
        num_heads=H, stride=S, attw_dtype=attw_dtype, q_tile=q_tile)

    out = linear(out.reshape(B * Tq, D), dparams['Wo_t'], dparams['bo']).reshape(B, Tq, D)
    hidden = {'key': k, 'value': v}
    return out, att_w, hidden


# ---------------------- pure-JAX reference (torch ops) ------------------------

def reference(query, key, value, params, num_heads, stride, max_pos_encoding):
    B, T, D = query.shape
    H, S = num_heads, stride
    dh = D // H
    q = query @ params['Wq'].T + params['bq']
    k = key @ params['Wk'].T + params['bk']
    v = value @ params['Wv'].T + params['bv']
    q = q[:, ::S]                                   # pad() is a no-op, then stride
    Tq = q.shape[1]
    Qu = q + params['u']
    Qv = q + params['v']
    pe = rel_pos_encoding(max_pos_encoding, D, seq_len=S * Tq)
    E = jnp.broadcast_to(pe[None], (B,) + pe.shape) @ params['Wp'].T + params['bp']
    Qu = Qu.reshape(B, Tq, H, dh).transpose(0, 2, 1, 3)
    Qv = Qv.reshape(B, Tq, H, dh).transpose(0, 2, 1, 3)
    k_ = k.reshape(B, T, H, dh).transpose(0, 2, 1, 3)
    v_ = v.reshape(B, T, H, dh).transpose(0, 2, 1, 3)
    E_ = E.reshape(B, 2 * T - 1, H, dh).transpose(0, 2, 1, 3)
    sK = Qu @ jnp.swapaxes(k_, 2, 3)                # (B,H,Tq,T)
    rel = Qv @ jnp.swapaxes(E_, 2, 3)               # (B,H,Tq,2T-1)
    # exact torch StridedRelPosMultiHeadSelfAttention.rel_to_abs (non-causal)
    L1, L2 = rel.shape[2], rel.shape[3]
    a = jnp.pad(rel, ((0, 0), (0, 0), (0, 0), (0, S)))
    a = a.reshape(B, H, -1)
    a = jnp.pad(a, ((0, 0), (0, 0), (0, L2 - L1 * S)))
    a = a.reshape(B, H, L1 + 1, L2)
    sE = a[:, :, :L1, L1 * S - 1:]                  # (B,H,Tq,T)
    scores = (sK + sE) / dh ** 0.5
    att = jax.nn.softmax(scores, axis=-1)
    out = att @ v_
    out = out.transpose(0, 2, 1, 3).reshape(B, Tq, D)
    out = out @ params['Wo'].T + params['bo']
    return out, att


# ----------------------------------- main -------------------------------------

if __name__ == "__main__":
    B, T, D, H, S = 2, 16, 32, 4, 2                 # Tq = 8, dh = 8
    key0 = jax.random.PRNGKey(0)
    kx, kp = jax.random.split(key0)
    x = jax.random.normal(kx, (B, T, D), jnp.float32)
    params = init_params(kp, D)
    dparams = make_device_params(params, num_heads=H)

    ref_out, ref_att = reference(x, x, x, params, H, S, T)

    # f32 path (tight numerical check of the kernel structure)
    fwd = jax.jit(lambda xx: strided_relpos_mhsa(
        xx, xx, xx, dparams, num_heads=H, stride=S, max_pos_encoding=T))
    out, att_w, hidden = fwd(x)
    jax.block_until_ready((out, att_w))

    assert out.shape == (B, T // S, D)
    assert att_w.shape == (B, H, T // S, T)
    assert jnp.allclose(out, ref_out, atol=5e-3, rtol=5e-3), \
        float(jnp.max(jnp.abs(out - ref_out)))
    assert jnp.allclose(att_w, ref_att, atol=5e-3, rtol=5e-3), \
        float(jnp.max(jnp.abs(att_w - ref_att)))

    # bf16 MXU-operand path (v6e/v7x): bf16 q/k/v/E, f32 softmax, bf16 attw
    fwd_bf16 = jax.jit(lambda xx: strided_relpos_mhsa(
        xx, xx, xx, dparams, num_heads=H, stride=S, max_pos_encoding=T,
        compute_dtype=jnp.bfloat16, attw_dtype=jnp.bfloat16))
    out_b, att_b, _ = fwd_bf16(x)
    jax.block_until_ready((out_b, att_b))
    assert jnp.allclose(out_b, ref_out, atol=1e-1, rtol=1e-1), \
        float(jnp.max(jnp.abs(out_b - ref_out)))
    assert jnp.allclose(att_b.astype(jnp.float32), ref_att, atol=5e-2, rtol=5e-2), \
        float(jnp.max(jnp.abs(att_b.astype(jnp.float32) - ref_att)))

    print("KERNEL_OK")
</pallas_src>

<mosaic_0001>
module attributes {stable_mosaic.version = 11 : i64} {
  func.func @_linear_kernel(%arg0: i32, %arg1: memref<16x32xf32, #tpu.memory_space<vmem>>, %arg2: memref<32x32xf32, #tpu.memory_space<vmem>>, %arg3: memref<1x32xf32, #tpu.memory_space<vmem>>, %arg4: memref<16x32xf32, #tpu.memory_space<vmem>>) attributes {dimension_semantics = [#tpu.dimension_semantics<parallel>], iteration_bounds = array<i64: 1>, scalar_prefetch = 0 : i64, scratch_operands = 0 : i64, tpu.core_type = #tpu.core_type<tc>, window_params = [{transform_indices = @transform_0, window_bounds = array<i64: 16, 32>}, {pipeline_mode = #tpu.pipeline_mode<synchronous>, transform_indices = @transform_1, window_bounds = array<i64: 32, 32>}, {pipeline_mode = #tpu.pipeline_mode<synchronous>, transform_indices = @transform_2, window_bounds = array<i64: 1, 32>}, {transform_indices = @transform_3, window_bounds = array<i64: 16, 32>}]} {
    %c0 = arith.constant 0 : index
    %c0_0 = arith.constant 0 : index
    %0 = vector.load %arg1[%c0, %c0_0] : memref<16x32xf32, #tpu.memory_space<vmem>>, vector<16x32xf32>
    %c0_1 = arith.constant 0 : index
    %c0_2 = arith.constant 0 : index
    %1 = vector.load %arg2[%c0_1, %c0_2] : memref<32x32xf32, #tpu.memory_space<vmem>>, vector<32x32xf32>
    %cst = arith.constant dense<0.000000e+00> : vector<16x32xf32>
    %2 = tpu.matmul %0, %1, %cst {dimension_numbers = #tpu.dot_dimension_numbers<[1], [0], [0], [1], [0, 0, 1, 1], [], []>} : vector<16x32xf32>, vector<32x32xf32>, vector<16x32xf32> -> vector<16x32xf32>
    %c0_3 = arith.constant 0 : index
    %c0_4 = arith.constant 0 : index
    %3 = vector.load %arg3[%c0_3, %c0_4] : memref<1x32xf32, #tpu.memory_space<vmem>>, vector<1x32xf32>
    %4 = vector.broadcast %3 : vector<1x32xf32> to vector<16x32xf32>
    %5 = arith.addf %2, %4 : vector<16x32xf32>
    %c0_5 = arith.constant 0 : index
    %c0_6 = arith.constant 0 : index
    %6 = vector.load %arg4[%c0_5, %c0_6] : memref<16x32xf32, #tpu.memory_space<vmem>>, vector<16x32xf32>
    tpu.vector_store %arg4[%c0_5, %c0_6], %5 {strides = array<i32>} : memref<16x32xf32, #tpu.memory_space<vmem>>, vector<16x32xf32>,
    return
  }
  func.func @transform_0(%arg0: i32) -> (i32, i32) {
    %c0_i32 = arith.constant 0 : i32
    %c0_i32_0 = arith.constant 0 : i32
    return %arg0, %c0_i32 : i32, i32
  }
  func.func @transform_1(%arg0: i32) -> (i32, i32) {
    %c0_i32 = arith.constant 0 : i32
    %c0_i32_0 = arith.constant 0 : i32
    %c0_i32_1 = arith.constant 0 : i32
    return %c0_i32, %c0_i32_0 : i32, i32
  }
  func.func @transform_2(%arg0: i32) -> (i32, i32) {
    %c0_i32 = arith.constant 0 : i32
    %c0_i32_0 = arith.constant 0 : i32
    %c0_i32_1 = arith.constant 0 : i32
    return %c0_i32, %c0_i32_0 : i32, i32
  }
  func.func @transform_3(%arg0: i32) -> (i32, i32) {
    %c0_i32 = arith.constant 0 : i32
    %c0_i32_0 = arith.constant 0 : i32
    return %arg0, %c0_i32 : i32, i32
  }
}

module attributes {stable_mosaic.version = 11 : i64} {
  func.func @_linear_kernel(%arg0: i32, %arg1: memref<31x32xf32, #tpu.memory_space<vmem>>, %arg2: memref<32x32xf32, #tpu.memory_space<vmem>>, %arg3: memref<1x32xf32, #tpu.memory_space<vmem>>, %arg4: memref<31x32xf32, #tpu.memory_space<vmem>>) attributes {dimension_semantics = [#tpu.dimension_semantics<parallel>], iteration_bounds = array<i64: 1>, scalar_prefetch = 0 : i64, scratch_operands = 0 : i64, tpu.core_type = #tpu.core_type<tc>, window_params = [{transform_indices = @transform_0, window_bounds = array<i64: 31, 32>}, {pipeline_mode = #tpu.pipeline_mode<synchronous>, transform_indices = @transform_1, window_bounds = array<i64: 32, 32>}, {pipeline_mode = #tpu.pipeline_mode<synchronous>, transform_indices = @transform_2, window_bounds = array<i64: 1, 32>}, {transform_indices = @transform_3, window_bounds = array<i64: 31, 32>}]} {
    %c0 = arith.constant 0 : index
    %c0_0 = arith.constant 0 : index
    %0 = vector.load %arg1[%c0, %c0_0] : memref<31x32xf32, #tpu.memory_space<vmem>>, vector<31x32xf32>
    %c0_1 = arith.constant 0 : index
    %c0_2 = arith.constant 0 : index
    %1 = vector.load %arg2[%c0_1, %c0_2] : memref<32x32xf32, #tpu.memory_space<vmem>>, vector<32x32xf32>
    %cst = arith.constant dense<0.000000e+00> : vector<31x32xf32>
    %2 = tpu.matmul %0, %1, %cst {dimension_numbers = #tpu.dot_dimension_numbers<[1], [0], [0], [1], [0, 0, 1, 1], [], []>} : vector<31x32xf32>, vector<32x32xf32>, vector<31x32xf32> -> vector<31x32xf32>
    %c0_3 = arith.constant 0 : index
    %c0_4 = arith.constant 0 : index
    %3 = vector.load %arg3[%c0_3, %c0_4] : memref<1x32xf32, #tpu.memory_space<vmem>>, vector<1x32xf32>
    %4 = vector.broadcast %3 : vector<1x32xf32> to vector<31x32xf32>
    %5 = arith.addf %2, %4 : vector<31x32xf32>
    %c0_5 = arith.constant 0 : index
    %c0_6 = arith.constant 0 : index
    %6 = vector.load %arg4[%c0_5, %c0_6] : memref<31x32xf32, #tpu.memory_space<vmem>>, vector<31x32xf32>
    tpu.vector_store %arg4[%c0_5, %c0_6], %5 {strides = array<i32>} : memref<31x32xf32, #tpu.memory_space<vmem>>, vector<31x32xf32>,
    return
  }
  func.func @transform_0(%arg0: i32) -> (i32, i32) {
    %c0_i32 = arith.constant 0 : i32
    %c0_i32_0 = arith.constant 0 : i32
    return %arg0, %c0_i32 : i32, i32
  }
  func.func @transform_1(%arg0: i32) -> (i32, i32) {
    %c0_i32 = arith.constant 0 : i32
    %c0_i32_0 = arith.constant 0 : i32
    %c0_i32_1 = arith.constant 0 : i32
    return %c0_i32, %c0_i32_0 : i32, i32
  }
  func.func @transform_2(%arg0: i32) -> (i32, i32) {
    %c0_i32 = arith.constant 0 : i32
    %c0_i32_0 = arith.constant 0 : i32
    %c0_i32_1 = arith.constant 0 : i32
    return %c0_i32, %c0_i32_0 : i32, i32
  }
  func.func @transform_3(%arg0: i32) -> (i32, i32) {
    %c0_i32 = arith.constant 0 : i32
    %c0_i32_0 = arith.constant 0 : i32
    return %arg0, %c0_i32 : i32, i32
  }
}

module attributes {stable_mosaic.version = 11 : i64} {
  func.func @_linear_kernel(%arg0: i32, %arg1: memref<32x32xf32, #tpu.memory_space<vmem>>, %arg2: memref<32x64xf32, #tpu.memory_space<vmem>>, %arg3: memref<1x64xf32, #tpu.memory_space<vmem>>, %arg4: memref<32x64xf32, #tpu.memory_space<vmem>>) attributes {dimension_semantics = [#tpu.dimension_semantics<parallel>], iteration_bounds = array<i64: 1>, scalar_prefetch = 0 : i64, scratch_operands = 0 : i64, tpu.core_type = #tpu.core_type<tc>, window_params = [{transform_indices = @transform_0, window_bounds = array<i64: 32, 32>}, {pipeline_mode = #tpu.pipeline_mode<synchronous>, transform_indices = @transform_1, window_bounds = array<i64: 32, 64>}, {pipeline_mode = #tpu.pipeline_mode<synchronous>, transform_indices = @transform_2, window_bounds = array<i64: 1, 64>}, {transform_indices = @transform_3, window_bounds = array<i64: 32, 64>}]} {
    %c0 = arith.constant 0 : index
    %c0_0 = arith.constant 0 : index
    %0 = vector.load %arg1[%c0, %c0_0] : memref<32x32xf32, #tpu.memory_space<vmem>>, vector<32x32xf32>
    %c0_1 = arith.constant 0 : index
    %c0_2 = arith.constant 0 : index
    %1 = vector.load %arg2[%c0_1, %c0_2] : memref<32x64xf32, #tpu.memory_space<vmem>>, vector<32x64xf32>
    %cst = arith.constant dense<0.000000e+00> : vector<32x64xf32>
    %2 = tpu.matmul %0, %1, %cst {dimension_numbers = #tpu.dot_dimension_numbers<[1], [0], [0], [1], [0, 0, 1, 1], [], []>} : vector<32x32xf32>, vector<32x64xf32>, vector<32x64xf32> -> vector<32x64xf32>
    %c0_3 = arith.constant 0 : index
    %c0_4 = arith.constant 0 : index
    %3 = vector.load %arg3[%c0_3, %c0_4] : memref<1x64xf32, #tpu.memory_space<vmem>>, vector<1x64xf32>
    %4 = vector.broadcast %3 : vector<1x64xf32> to vector<32x64xf32>
    %5 = arith.addf %2, %4 : vector<32x64xf32>
    %c0_5 = arith.constant 0 : index
    %c0_6 = arith.constant 0 : index
    %6 = vector.load %arg4[%c0_5, %c0_6] : memref<32x64xf32, #tpu.memory_space<vmem>>, vector<32x64xf32>
    tpu.vector_store %arg4[%c0_5, %c0_6], %5 {strides = array<i32>} : memref<32x64xf32, #tpu.memory_space<vmem>>, vector<32x64xf32>,
    return
  }
  func.func @transform_0(%arg0: i32) -> (i32, i32) {
    %c0_i32 = arith.constant 0 : i32
    %c0_i32_0 = arith.constant 0 : i32
    return %arg0, %c0_i32 : i32, i32
  }
  func.func @transform_1(%arg0: i32) -> (i32, i32) {
    %c0_i32 = arith.constant 0 : i32
    %c0_i32_0 = arith.constant 0 : i32
    %c0_i32_1 = arith.constant 0 : i32
    return %c0_i32, %c0_i32_0 : i32, i32
  }
  func.func @transform_2(%arg0: i32) -> (i32, i32) {
    %c0_i32 = arith.constant 0 : i32
    %c0_i32_0 = arith.constant 0 : i32
    %c0_i32_1 = arith.constant 0 : i32
    return %c0_i32, %c0_i32_0 : i32, i32
  }
  func.func @transform_3(%arg0: i32) -> (i32, i32) {
    %c0_i32 = arith.constant 0 : i32
    %c0_i32_0 = arith.constant 0 : i32
    return %arg0, %c0_i32 : i32, i32
  }
}

module attributes {stable_mosaic.version = 11 : i64} {
  func.func @_linear_kernel(%arg0: i32, %arg1: memref<16x32xf32, #tpu.memory_space<vmem>>, %arg2: memref<32x32xf32, #tpu.memory_space<vmem>>, %arg3: memref<1x32xf32, #tpu.memory_space<vmem>>, %arg4: memref<16x32xf32, #tpu.memory_space<vmem>>) attributes {dimension_semantics = [#tpu.dimension_semantics<parallel>], iteration_bounds = array<i64: 1>, scalar_prefetch = 0 : i64, scratch_operands = 0 : i64, tpu.core_type = #tpu.core_type<tc>, window_params = [{transform_indices = @transform_0, window_bounds = array<i64: 16, 32>}, {pipeline_mode = #tpu.pipeline_mode<synchronous>, transform_indices = @transform_1, window_bounds = array<i64: 32, 32>}, {pipeline_mode = #tpu.pipeline_mode<synchronous>, transform_indices = @transform_2, window_bounds = array<i64: 1, 32>}, {transform_indices = @transform_3, window_bounds = array<i64: 16, 32>}]} {
    %c0 = arith.constant 0 : index
    %c0_0 = arith.constant 0 : index
    %0 = vector.load %arg1[%c0, %c0_0] : memref<16x32xf32, #tpu.memory_space<vmem>>, vector<16x32xf32>
    %c0_1 = arith.constant 0 : index
    %c0_2 = arith.constant 0 : index
    %1 = vector.load %arg2[%c0_1, %c0_2] : memref<32x32xf32, #tpu.memory_space<vmem>>, vector<32x32xf32>
    %cst = arith.constant dense<0.000000e+00> : vector<16x32xf32>
    %2 = tpu.matmul %0, %1, %cst {dimension_numbers = #tpu.dot_dimension_numbers<[1], [0], [0], [1], [0, 0, 1, 1], [], []>} : vector<16x32xf32>, vector<32x32xf32>, vector<16x32xf32> -> vector<16x32xf32>
    %c0_3 = arith.constant 0 : index
    %c0_4 = arith.constant 0 : index
    %3 = vector.load %arg3[%c0_3, %c0_4] : memref<1x32xf32, #tpu.memory_space<vmem>>, vector<1x32xf32>
    %4 = vector.broadcast %3 : vector<1x32xf32> to vector<16x32xf32>
    %5 = arith.addf %2, %4 : vector<16x32xf32>
    %c0_5 = arith.constant 0 : index
    %c0_6 = arith.constant 0 : index
    %6 = vector.load %arg4[%c0_5, %c0_6] : memref<16x32xf32, #tpu.memory_space<vmem>>, vector<16x32xf32>
    tpu.vector_store %arg4[%c0_5, %c0_6], %5 {strides = array<i32>} : memref<16x32xf32, #tpu.memory_space<vmem>>, vector<16x32xf32>,
    return
  }
  func.func @transform_0(%arg0: i32) -> (i32, i32) {
    %c0_i32 = arith.constant 0 : i32
    %c0_i32_0 = arith.constant 0 : i32
    return %arg0, %c0_i32 : i32, i32
  }
  func.func @transform_1(%arg0: i32) -> (i32, i32) {
    %c0_i32 = arith.constant 0 : i32
    %c0_i32_0 = arith.constant 0 : i32
    %c0_i32_1 = arith.constant 0 : i32
    return %c0_i32, %c0_i32_0 : i32, i32
  }
  func.func @transform_2(%arg0: i32) -> (i32, i32) {
    %c0_i32 = arith.constant 0 : i32
    %c0_i32_0 = arith.constant 0 : i32
    %c0_i32_1 = arith.constant 0 : i32
    return %c0_i32, %c0_i32_0 : i32, i32
  }
  func.func @transform_3(%arg0: i32) -> (i32, i32) {
    %c0_i32 = arith.constant 0 : i32
    %c0_i32_0 = arith.constant 0 : i32
    return %arg0, %c0_i32 : i32, i32
  }
}

module attributes {stable_mosaic.version = 11 : i64} {
  func.func @_strided_relpos_attn_kernel(%arg0: i32, %arg1: i32, %arg2: memref<1x8x32xf32, #tpu.memory_space<vmem>>, %arg3: memref<1x16x32xf32, #tpu.memory_space<vmem>>, %arg4: memref<1x16x32xf32, #tpu.memory_space<vmem>>, %arg5: memref<128x32xf32, #tpu.memory_space<vmem>>, %arg6: memref<1x4x16xf32, #tpu.memory_space<vmem>>, %arg7: memref<4x128xf32, #tpu.memory_space<vmem>>, %arg8: memref<1x8x32xf32, #tpu.memory_space<vmem>>, %arg9: memref<1x4x8x16xf32, #tpu.memory_space<vmem>>) attributes {dimension_semantics = [#tpu.dimension_semantics<parallel>, #tpu.dimension_semantics<parallel>], iteration_bounds = array<i64: 2, 1>, scalar_prefetch = 0 : i64, scratch_operands = 0 : i64, tpu.core_type = #tpu.core_type<tc>, window_params = [{transform_indices = @transform_0, window_bounds = array<i64: 1, 8, 32>}, {transform_indices = @transform_1, window_bounds = array<i64: 1, 16, 32>}, {transform_indices = @transform_2, window_bounds = array<i64: 1, 16, 32>}, {pipeline_mode = #tpu.pipeline_mode<synchronous>, transform_indices = @transform_3, window_bounds = array<i64: 128, 32>}, {transform_indices = @transform_4, window_bounds = array<i64: 1, 4, 16>}, {pipeline_mode = #tpu.pipeline_mode<synchronous>, transform_indices = @transform_5, window_bounds = array<i64: 4, 128>}, {transform_indices = @transform_6, window_bounds = array<i64: 1, 8, 32>}, {transform_indices = @transform_7, window_bounds = array<i64: 1, 4, 8, 16>}]} {
    %c0 = arith.constant 0 : index
    %c0_0 = arith.constant 0 : index
    %c0_1 = arith.constant 0 : index
    %0 = vector.load %arg2[%c0, %c0_0, %c0_1] : memref<1x8x32xf32, #tpu.memory_space<vmem>>, vector<1x8x32xf32>
    %1 = vector.shape_cast %0 : vector<1x8x32xf32> to vector<8x32xf32>
    %c0_2 = arith.constant 0 : index
    %c0_3 = arith.constant 0 : index
    %c0_4 = arith.constant 0 : index
    %2 = vector.load %arg3[%c0_2, %c0_3, %c0_4] : memref<1x16x32xf32, #tpu.memory_space<vmem>>, vector<1x16x32xf32>
    %3 = vector.shape_cast %2 : vector<1x16x32xf32> to vector<16x32xf32>
    %c0_5 = arith.constant 0 : index
    %c0_6 = arith.constant 0 : index
    %c0_7 = arith.constant 0 : index
    %4 = vector.load %arg4[%c0_5, %c0_6, %c0_7] : memref<1x16x32xf32, #tpu.memory_space<vmem>>, vector<1x16x32xf32>
    %5 = vector.shape_cast %4 : vector<1x16x32xf32> to vector<16x32xf32>
    %c0_8 = arith.constant 0 : index
    %c0_9 = arith.constant 0 : index
    %6 = vector.load %arg5[%c0_8, %c0_9] : memref<128x32xf32, #tpu.memory_space<vmem>>, vector<128x32xf32>
    %7 = tpu.concatenate %6, %3 in 0 : vector<128x32xf32>, vector<16x32xf32> -> vector<144x32xf32>
    %8 = vector.extract_strided_slice %1 {offsets = [0, 0], sizes = [8, 8], strides = [1, 1]} : vector<8x32xf32> to vector<8x8xf32>
    %9 = vector.extract_strided_slice %7 {offsets = [0, 0], sizes = [144, 8], strides = [1, 1]} : vector<144x32xf32> to vector<144x8xf32>
    %cst = arith.constant dense<0.000000e+00> : vector<8x144xf32>
    %10 = tpu.matmul %8, %9, %cst {dimension_numbers = #tpu.dot_dimension_numbers<[1], [1], [0], [0], [0, 0, 1, 0], [], []>} : vector<8x8xf32>, vector<144x8xf32>, vector<8x144xf32> -> vector<8x144xf32>
    %11 = vector.extract_strided_slice %10 {offsets = [0, 0], sizes = [8, 128], strides = [1, 1]} : vector<8x144xf32> to vector<8x128xf32>
    %c0_10 = arith.constant 0 : index
    %c0_11 = arith.constant 0 : index
    %12 = vector.load %arg7[%c0_10, %c0_11] : memref<4x128xf32, #tpu.memory_space<vmem>>, vector<1x128xf32>
    %13 = vector.broadcast %12 : vector<1x128xf32> to vector<8x128xf32>
    %14 = arith.addf %11, %13 : vector<8x128xf32>
    %15 = vector.extract_strided_slice %10 {offsets = [0, 128], sizes = [8, 16], strides = [1, 1]} : vector<8x144xf32> to vector<8x16xf32>
    %c0_12 = arith.constant 0 : index
    %c0_13 = arith.constant 0 : index
    %c0_14 = arith.constant 0 : index
    %16 = vector.load %arg6[%c0_12, %c0_13, %c0_14] : memref<1x4x16xf32, #tpu.memory_space<vmem>>, vector<1x1x16xf32>
    %17 = vector.shape_cast %16 : vector<1x1x16xf32> to vector<1x16xf32>
    %18 = vector.broadcast %17 : vector<1x16xf32> to vector<8x16xf32>
    %19 = arith.addf %15, %18 : vector<8x16xf32>
    %c113_i32 = arith.constant 113 : i32
    %20 = tpu.dynamic_rotate %14 by %c113_i32 dim 1 {stride = 2 : si32, stride_dimension = 0 : si32} : vector<8x128xf32>, i32 -> vector<8x128xf32>
    %21 = vector.extract_strided_slice %20 {offsets = [0, 0], sizes = [8, 16], strides = [1, 1]} : vector<8x128xf32> to vector<8x16xf32>
    %22 = arith.addf %19, %21 : vector<8x16xf32>
    %cst_15 = arith.constant dense<0xFF800000> : vector<8xf32>
    %23 = vector.multi_reduction <maximumf>, %22, %cst_15 [1] : vector<8x16xf32> to vector<8xf32>
    %24 = vector.shape_cast %23 : vector<8xf32> to vector<8x1xf32>
    %25 = vector.broadcast %24 : vector<8x1xf32> to vector<8x16xf32>
    %26 = arith.subf %22, %25 : vector<8x16xf32>
    %27 = math.exp %26 : vector<8x16xf32>
    %cst_16 = arith.constant dense<0.000000e+00> : vector<8xf32>
    %28 = vector.multi_reduction <add>, %27, %cst_16 [1] : vector<8x16xf32> to vector<8xf32>
    %29 = vector.shape_cast %28 : vector<8xf32> to vector<8x1xf32>
    %30 = tpu.reciprocal %29 {approx = true} : vector<8x1xf32> -> vector<8x1xf32>
    %31 = vector.broadcast %30 : vector<8x1xf32> to vector<8x16xf32>
    %32 = arith.mulf %27, %31 : vector<8x16xf32>
    %c0_17 = arith.constant 0 : index
    %c0_18 = arith.constant 0 : index
    %c0_19 = arith.constant 0 : index
    %c0_20 = arith.constant 0 : index
    %33 = vector.load %arg9[%c0_17, %c0_18, %c0_19, %c0_20] : memref<1x4x8x16xf32, #tpu.memory_space<vmem>>, vector<1x1x8x16xf32>
    %34 = vector.shape_cast %33 : vector<1x1x8x16xf32> to vector<8x16xf32>
    %35 = vector.shape_cast %32 : vector<8x16xf32> to vector<1x1x8x16xf32>
    tpu.vector_store %arg9[%c0_17, %c0_18, %c0_19, %c0_20], %35 {strides = array<i32>} : memref<1x4x8x16xf32, #tpu.memory_space<vmem>>, vector<1x1x8x16xf32>,
    %36 = vector.extract_strided_slice %5 {offsets = [0, 0], sizes = [16, 8], strides = [1, 1]} : vector<16x32xf32> to vector<16x8xf32>
    %cst_21 = arith.constant dense<0.000000e+00> : vector<8x8xf32>
    %37 = tpu.matmul %32, %36, %cst_21 {dimension_numbers = #tpu.dot_dimension_numbers<[1], [0], [0], [1], [0, 0, 1, 1], [], []>} : vector<8x16xf32>, vector<16x8xf32>, vector<8x8xf32> -> vector<8x8xf32>
    %38 = vector.extract_strided_slice %1 {offsets = [0, 8], sizes = [8, 8], strides = [1, 1]} : vector<8x32xf32> to vector<8x8xf32>
    %39 = vector.extract_strided_slice %7 {offsets = [0, 8], sizes = [144, 8], strides = [1, 1]} : vector<144x32xf32> to vector<144x8xf32>
    %cst_22 = arith.constant dense<0.000000e+00> : vector<8x144xf32>
    %40 = tpu.matmul %38, %39, %cst_22 {dimension_numbers = #tpu.dot_dimension_numbers<[1], [1], [0], [0], [0, 0, 1, 0], [], []>} : vector<8x8xf32>, vector<144x8xf32>, vector<8x144xf32> -> vector<8x144xf32>
    %41 = vector.extract_strided_slice %40 {offsets = [0, 0], sizes = [8, 128], strides = [1, 1]} : vector<8x144xf32> to vector<8x128xf32>
    %c1 = arith.constant 1 : index
    %c0_23 = arith.constant 0 : index
    %42 = vector.load %arg7[%c1, %c0_23] : memref<4x128xf32, #tpu.memory_space<vmem>>, vector<1x128xf32>
    %43 = vector.broadcast %42 : vector<1x128xf32> to vector<8x128xf32>
    %44 = arith.addf %41, %43 : vector<8x128xf32>
    %45 = vector.extract_strided_slice %40 {offsets = [0, 128], sizes = [8, 16], strides = [1, 1]} : vector<8x144xf32> to vector<8x16xf32>
    %c0_24 = arith.constant 0 : index
    %c1_25 = arith.constant 1 : index
    %c0_26 = arith.constant 0 : index
    %46 = vector.load %arg6[%c0_24, %c1_25, %c0_26] : memref<1x4x16xf32, #tpu.memory_space<vmem>>, vector<1x1x16xf32>
    %47 = vector.shape_cast %46 : vector<1x1x16xf32> to vector<1x16xf32>
    %48 = vector.broadcast %47 : vector<1x16xf32> to vector<8x16xf32>
    %49 = arith.addf %45, %48 : vector<8x16xf32>
    %c113_i32_27 = arith.constant 113 : i32
    %50 = tpu.dynamic_rotate %44 by %c113_i32_27 dim 1 {stride = 2 : si32, stride_dimension = 0 : si32} : vector<8x128xf32>, i32 -> vector<8x128xf32>
    %51 = vector.extract_strided_slice %50 {offsets = [0, 0], sizes = [8, 16], strides = [1, 1]} : vector<8x128xf32> to vector<8x16xf32>
    %52 = arith.addf %49, %51 : vector<8x16xf32>
    %cst_28 = arith.constant dense<0xFF800000> : vector<8xf32>
    %53 = vector.multi_reduction <maximumf>, %52, %cst_28 [1] : vector<8x16xf32> to vector<8xf32>
    %54 = vector.shape_cast %53 : vector<8xf32> to vector<8x1xf32>
    %55 = vector.broadcast %54 : vector<8x1xf32> to vector<8x16xf32>
    %56 = arith.subf %52, %55 : vector<8x16xf32>
    %57 = math.exp %56 : vector<8x16xf32>
    %cst_29 = arith.constant dense<0.000000e+00> : vector<8xf32>
    %58 = vector.multi_reduction <add>, %57, %cst_29 [1] : vector<8x16xf32> to vector<8xf32>
    %59 = vector.shape_cast %58 : vector<8xf32> to vector<8x1xf32>
    %60 = tpu.reciprocal %59 {approx = true} : vector<8x1xf32> -> vector<8x1xf32>
    %61 = vector.broadcast %60 : vector<8x1xf32> to vector<8x16xf32>
    %62 = arith.mulf %57, %61 : vector<8x16xf32>
    %c0_30 = arith.constant 0 : index
    %c1_31 = arith.constant 1 : index
    %c0_32 = arith.constant 0 : index
    %c0_33 = arith.constant 0 : index
    %63 = vector.load %arg9[%c0_30, %c1_31, %c0_32, %c0_33] : memref<1x4x8x16xf32, #tpu.memory_space<vmem>>, vector<1x1x8x16xf32>
    %64 = vector.shape_cast %63 : vector<1x1x8x16xf32> to vector<8x16xf32>
    %65 = vector.shape_cast %62 : vector<8x16xf32> to vector<1x1x8x16xf32>
    tpu.vector_store %arg9[%c0_30, %c1_31, %c0_32, %c0_33], %65 {strides = array<i32>} : memref<1x4x8x16xf32, #tpu.memory_space<vmem>>, vector<1x1x8x16xf32>,
    %66 = vector.extract_strided_slice %5 {offsets = [0, 8], sizes = [16, 8], strides = [1, 1]} : vector<16x32xf32> to vector<16x8xf32>
    %cst_34 = arith.constant dense<0.000000e+00> : vector<8x8xf32>
    %67 = tpu.matmul %62, %66, %cst_34 {dimension_numbers = #tpu.dot_dimension_numbers<[1], [0], [0], [1], [0, 0, 1, 1], [], []>} : vector<8x16xf32>, vector<16x8xf32>, vector<8x8xf32> -> vector<8x8xf32>
    %68 = vector.extract_strided_slice %1 {offsets = [0, 16], sizes = [8, 8], strides = [1, 1]} : vector<8x32xf32> to vector<8x8xf32>
    %69 = vector.extract_strided_slice %7 {offsets = [0, 16], sizes = [144, 8], strides = [1, 1]} : vector<144x32xf32> to vector<144x8xf32>
    %cst_35 = arith.constant dense<0.000000e+00> : vector<8x144xf32>
    %70 = tpu.matmul %68, %69, %cst_35 {dimension_numbers = #tpu.dot_dimension_numbers<[1], [1], [0], [0], [0, 0, 1, 0], [], []>} : vector<8x8xf32>, vector<144x8xf32>, vector<8x144xf32> -> vector<8x144xf32>
    %71 = vector.extract_strided_slice %70 {offsets = [0, 0], sizes = [8, 128], strides = [1, 1]} : vector<8x144xf32> to vector<8x128xf32>
    %c2 = arith.constant 2 : index
    %c0_36 = arith.constant 0 : index
    %72 = vector.load %arg7[%c2, %c0_36] : memref<4x128xf32, #tpu.memory_space<vmem>>, vector<1x128xf32>
    %73 = vector.broadcast %72 : vector<1x128xf32> to vector<8x128xf32>
    %74 = arith.addf %71, %73 : vector<8x128xf32>
    %75 = vector.extract_strided_slice %70 {offsets = [0, 128], sizes = [8, 16], strides = [1, 1]} : vector<8x144xf32> to vector<8x16xf32>
    %c0_37 = arith.constant 0 : index
    %c2_38 = arith.constant 2 : index
    %c0_39 = arith.constant 0 : index
    %76 = vector.load %arg6[%c0_37, %c2_38, %c0_39] : memref<1x4x16xf32, #tpu.memory_space<vmem>>, vector<1x1x16xf32>
    %77 = vector.shape_cast %76 : vector<1x1x16xf32> to vector<1x16xf32>
    %78 = vector.broadcast %77 : vector<1x16xf32> to vector<8x16xf32>
    %79 = arith.addf %75, %78 : vector<8x16xf32>
    %c113_i32_40 = arith.constant 113 : i32
    %80 = tpu.dynamic_rotate %74 by %c113_i32_40 dim 1 {stride = 2 : si32, stride_dimension = 0 : si32} : vector<8x128xf32>, i32 -> vector<8x128xf32>
    %81 = vector.extract_strided_slice %80 {offsets = [0, 0], sizes = [8, 16], strides = [1, 1]} : vector<8x128xf32> to vector<8x16xf32>
    %82 = arith.addf %79, %81 : vector<8x16xf32>
    %cst_41 = arith.constant dense<0xFF800000> : vector<8xf32>
    %83 = vector.multi_reduction <maximumf>, %82, %cst_41 [1] : vector<8x16xf32> to vector<8xf32>
    %84 = vector.shape_cast %83 : vector<8xf32> to vector<8x1xf32>
    %85 = vector.broadcast %84 : vector<8x1xf32> to vector<8x16xf32>
    %86 = arith.subf %82, %85 : vector<8x16xf32>
    %87 = math.exp %86 : vector<8x16xf32>
    %cst_42 = arith.constant dense<0.000000e+00> : vector<8xf32>
    %88 = vector.multi_reduction <add>, %87, %cst_42 [1] : vector<8x16xf32> to vector<8xf32>
    %89 = vector.shape_cast %88 : vector<8xf32> to vector<8x1xf32>
    %90 = tpu.reciprocal %89 {approx = true} : vector<8x1xf32> -> vector<8x1xf32>
    %91 = vector.broadcast %90 : vector<8x1xf32> to vector<8x16xf32>
    %92 = arith.mulf %87, %91 : vector<8x16xf32>
    %c0_43 = arith.constant 0 : index
    %c2_44 = arith.constant 2 : index
    %c0_45 = arith.constant 0 : index
    %c0_46 = arith.constant 0 : index
    %93 = vector.load %arg9[%c0_43, %c2_44, %c0_45, %c0_46] : memref<1x4x8x16xf32, #tpu.memory_space<vmem>>, vector<1x1x8x16xf32>
    %94 = vector.shape_cast %93 : vector<1x1x8x16xf32> to vector<8x16xf32>
    %95 = vector.shape_cast %92 : vector<8x16xf32> to vector<1x1x8x16xf32>
    tpu.vector_store %arg9[%c0_43, %c2_44, %c0_45, %c0_46], %95 {strides = array<i32>} : memref<1x4x8x16xf32, #tpu.memory_space<vmem>>, vector<1x1x8x16xf32>,
    %96 = vector.extract_strided_slice %5 {offsets = [0, 16], sizes = [16, 8], strides = [1, 1]} : vector<16x32xf32> to vector<16x8xf32>
    %cst_47 = arith.constant dense<0.000000e+00> : vector<8x8xf32>
    %97 = tpu.matmul %92, %96, %cst_47 {dimension_numbers = #tpu.dot_dimension_numbers<[1], [0], [0], [1], [0, 0, 1, 1], [], []>} : vector<8x16xf32>, vector<16x8xf32>, vector<8x8xf32> -> vector<8x8xf32>
    %98 = vector.extract_strided_slice %1 {offsets = [0, 24], sizes = [8, 8], strides = [1, 1]} : vector<8x32xf32> to vector<8x8xf32>
    %99 = vector.extract_strided_slice %7 {offsets = [0, 24], sizes = [144, 8], strides = [1, 1]} : vector<144x32xf32> to vector<144x8xf32>
    %cst_48 = arith.constant dense<0.000000e+00> : vector<8x144xf32>
    %100 = tpu.matmul %98, %99, %cst_48 {dimension_numbers = #tpu.dot_dimension_numbers<[1], [1], [0], [0], [0, 0, 1, 0], [], []>} : vector<8x8xf32>, vector<144x8xf32>, vector<8x144xf32> -> vector<8x144xf32>
    %101 = vector.extract_strided_slice %100 {offsets = [0, 0], sizes = [8, 128], strides = [1, 1]} : vector<8x144xf32> to vector<8x128xf32>
    %c3 = arith.constant 3 : index
    %c0_49 = arith.constant 0 : index
    %102 = vector.load %arg7[%c3, %c0_49] : memref<4x128xf32, #tpu.memory_space<vmem>>, vector<1x128xf32>
    %103 = vector.broadcast %102 : vector<1x128xf32> to vector<8x128xf32>
    %104 = arith.addf %101, %103 : vector<8x128xf32>
    %105 = vector.extract_strided_slice %100 {offsets = [0, 128], sizes = [8, 16], strides = [1, 1]} : vector<8x144xf32> to vector<8x16xf32>
    %c0_50 = arith.constant 0 : index
    %c3_51 = arith.constant 3 : index
    %c0_52 = arith.constant 0 : index
    %106 = vector.load %arg6[%c0_50, %c3_51, %c0_52] : memref<1x4x16xf32, #tpu.memory_space<vmem>>, vector<1x1x16xf32>
    %107 = vector.shape_cast %106 : vector<1x1x16xf32> to vector<1x16xf32>
    %108 = vector.broadcast %107 : vector<1x16xf32> to vector<8x16xf32>
    %109 = arith.addf %105, %108 : vector<8x16xf32>
    %c113_i32_53 = arith.constant 113 : i32
    %110 = tpu.dynamic_rotate %104 by %c113_i32_53 dim 1 {stride = 2 : si32, stride_dimension = 0 : si32} : vector<8x128xf32>, i32 -> vector<8x128xf32>
    %111 = vector.extract_strided_slice %110 {offsets = [0, 0], sizes = [8, 16], strides = [1, 1]} : vector<8x128xf32> to vector<8x16xf32>
    %112 = arith.addf %109, %111 : vector<8x16xf32>
    %cst_54 = arith.constant dense<0xFF800000> : vector<8xf32>
    %113 = vector.multi_reduction <maximumf>, %112, %cst_54 [1] : vector<8x16xf32> to vector<8xf32>
    %114 = vector.shape_cast %113 : vector<8xf32> to vector<8x1xf32>
    %115 = vector.broadcast %114 : vector<8x1xf32> to vector<8x16xf32>
    %116 = arith.subf %112, %115 : vector<8x16xf32>
    %117 = math.exp %116 : vector<8x16xf32>
    %cst_55 = arith.constant dense<0.000000e+00> : vector<8xf32>
    %118 = vector.multi_reduction <add>, %117, %cst_55 [1] : vector<8x16xf32> to vector<8xf32>
    %119 = vector.shape_cast %118 : vector<8xf32> to vector<8x1xf32>
    %120 = tpu.reciprocal %119 {approx = true} : vector<8x1xf32> -> vector<8x1xf32>
    %121 = vector.broadcast %120 : vector<8x1xf32> to vector<8x16xf32>
    %122 = arith.mulf %117, %121 : vector<8x16xf32>
    %c0_56 = arith.constant 0 : index
    %c3_57 = arith.constant 3 : index
    %c0_58 = arith.constant 0 : index
    %c0_59 = arith.constant 0 : index
    %123 = vector.load %arg9[%c0_56, %c3_57, %c0_58, %c0_59] : memref<1x4x8x16xf32, #tpu.memory_space<vmem>>, vector<1x1x8x16xf32>
    %124 = vector.shape_cast %123 : vector<1x1x8x16xf32> to vector<8x16xf32>
    %125 = vector.shape_cast %122 : vector<8x16xf32> to vector<1x1x8x16xf32>
    tpu.vector_store %arg9[%c0_56, %c3_57, %c0_58, %c0_59], %125 {strides = array<i32>} : memref<1x4x8x16xf32, #tpu.memory_space<vmem>>, vector<1x1x8x16xf32>,
    %126 = vector.extract_strided_slice %5 {offsets = [0, 24], sizes = [16, 8], strides = [1, 1]} : vector<16x32xf32> to vector<16x8xf32>
    %cst_60 = arith.constant dense<0.000000e+00> : vector<8x8xf32>
    %127 = tpu.matmul %122, %126, %cst_60 {dimension_numbers = #tpu.dot_dimension_numbers<[1], [0], [0], [1], [0, 0, 1, 1], [], []>} : vector<8x16xf32>, vector<16x8xf32>, vector<8x8xf32> -> vector<8x8xf32>
    %128 = tpu.concatenate %37, %67, %97, %127 in 1 : vector<8x8xf32>, vector<8x8xf32>, vector<8x8xf32>, vector<8x8xf32> -> vector<8x32xf32>
    %c0_61 = arith.constant 0 : index
    %c0_62 = arith.constant 0 : index
    %c0_63 = arith.constant 0 : index
    %129 = vector.load %arg8[%c0_61, %c0_62, %c0_63] : memref<1x8x32xf32, #tpu.memory_space<vmem>>, vector<1x8x32xf32>
    %130 = vector.shape_cast %129 : vector<1x8x32xf32> to vector<8x32xf32>
    %131 = vector.shape_cast %128 : vector<8x32xf32> to vector<1x8x32xf32>
    tpu.vector_store %arg8[%c0_61, %c0_62, %c0_63], %131 {strides = array<i32>} : memref<1x8x32xf32, #tpu.memory_space<vmem>>, vector<1x8x32xf32>,
    return
  }
  func.func @transform_0(%arg0: i32, %arg1: i32) -> (i32, i32, i32) {
    %c0_i32 = arith.constant 0 : i32
    %c0_i32_0 = arith.constant 0 : i32
    return %arg0, %arg1, %c0_i32 : i32, i32, i32
  }
  func.func @transform_1(%arg0: i32, %arg1: i32) -> (i32, i32, i32) {
    %c0_i32 = arith.constant 0 : i32
    %c0_i32_0 = arith.constant 0 : i32
    %c0_i32_1 = arith.constant 0 : i32
    return %arg0, %c0_i32, %c0_i32_0 : i32, i32, i32
  }
  func.func @transform_2(%arg0: i32, %arg1: i32) -> (i32, i32, i32) {
    %c0_i32 = arith.constant 0 : i32
    %c0_i32_0 = arith.constant 0 : i32
    %c0_i32_1 = arith.constant 0 : i32
    return %arg0, %c0_i32, %c0_i32_0 : i32, i32, i32
  }
  func.func @transform_3(%arg0: i32, %arg1: i32) -> (i32, i32) {
    %c0_i32 = arith.constant 0 : i32
    %c0_i32_0 = arith.constant 0 : i32
    %c0_i32_1 = arith.constant 0 : i32
    return %c0_i32, %c0_i32_0 : i32, i32
  }
  func.func @transform_4(%arg0: i32, %arg1: i32) -> (i32, i32, i32) {
    %c0_i32 = arith.constant 0 : i32
    %c0_i32_0 = arith.constant 0 : i32
    %c0_i32_1 = arith.constant 0 : i32
    return %arg0, %c0_i32, %c0_i32_0 : i32, i32, i32
  }
  func.func @transform_5(%arg0: i32, %arg1: i32) -> (i32, i32) {
    %c0_i32 = arith.constant 0 : i32
    %c0_i32_0 = arith.constant 0 : i32
    %c0_i32_1 = arith.constant 0 : i32
    return %c0_i32, %c0_i32_0 : i32, i32
  }
  func.func @transform_6(%arg0: i32, %arg1: i32) -> (i32, i32, i32) {
    %c0_i32 = arith.constant 0 : i32
    %c0_i32_0 = arith.constant 0 : i32
    return %arg0, %arg1, %c0_i32 : i32, i32, i32
  }
  func.func @transform_7(%arg0: i32, %arg1: i32) -> (i32, i32, i32, i32) {
    %c0_i32 = arith.constant 0 : i32
    %c0_i32_0 = arith.constant 0 : i32
    %c0_i32_1 = arith.constant 0 : i32
    return %arg0, %c0_i32, %arg1, %c0_i32_0 : i32, i32, i32, i32
  }
}

</mosaic_0001>

<bundles_post_ra>
// kernel: _lambda_.6
= control target key start
LH: loop header
LB: loop body
LE: loop exit
PB: predicated region body
PF: predicated region fallthrough
CT: control target
= control target key end

     0   :  { %vm27_vm0 = vcmask 261120   ;;  %s194_s1 = inlined_call_operand.vmem [shape: f32[32,32], index: 1, kind: input, shape index: {}]   ;;  %s195_s0 = inlined_call_operand.vmem [shape: f32[16,32], index: 0, kind: input, shape index: {}]   ;;  %s196_s2 = inlined_call_operand.vmem [shape: f32[1,32], index: 2, kind: input, shape index: {}]   ;;  %s197_s3 = inlined_call_operand.vmem [shape: f32[16,32], index: 3, kind: output, shape index: {}]  }
   0x1   :  { %v16_v0 = vld [vmem:[%s194_s1] sm:$0xff]  ;;  %v17_v1 = vld [vmem:[%s194_s1 + $0x8] sm:$0xff]  ;;  %v18_v2 = vld [vmem:[%s194_s1 + $0x10] sm:$0xff] }
   0x2   :  { %v135_v3 = vpack.c.bf16 %v17_v1, %v16_v0  ;;  %v19_v4 = vld [vmem:[%s194_s1 + $0x18] sm:$0xff]  ;;  %v14_v5 = vld [vmem:[%s195_s0] sm:$0xff]  ;;  %v15_v7 = vld [vmem:[%s195_s0 + $0x8] sm:$0xff] }
   0x3   :  { %v139_v6 = vpack.c.bf16 %v19_v4, %v18_v2  ;;  %132 = vmatprep.mubr.msk.f32.mxu0 %vm27_vm0, %v14_v5  ;;  %v115_v8 = vld [vmem:[%s196_s2] ss:$0 sm:$0xff] }
   0x4   :  { %136 = vmatprep.subr.bf16.mxu0 %v135_v3 }
   0x5   :  { %138 = vmatpush3.bf16.msra.mxu0 %v135_v3 }
   0x6   :  { %140 = vmatprep.subr.bf16.mxu0 %v139_v6 }
   0x9   :  { %142 = vmatpush3.bf16.msra.mxu0 %v139_v6 }
   0xc   :  { %133 = vmatmul.mubr.msk.f32.vlgmr.msra.gmra.mrb[0].mxu0 %vm27_vm0, %v15_v7 }
  0xdf   :  { %v134_v9 = vpop.f32.mrb[0].mxu0 }
  0xe0   :  { %v106_v10 = vadd.f32 %v134_v9, %v115_v8  ;;  %v100_v11 = vpop.f32.mrb[1].mxu0 }
  0xe1   :  { %v101_v12 = vadd.f32 %v115_v8, %v100_v11 }
  0xe2   :  { %110 = vst.msk [vmem:[%s197_s3 + $0x8] sm:$0xff] %vm27_vm0, %v106_v10 }
  0xe3   :  { %109 = vst.msk [vmem:[%s197_s3] sm:$0xff] %vm27_vm0, %v101_v12 }

// kernel: _lambda_.7
= control target key start
LH: loop header
LB: loop body
LE: loop exit
PB: predicated region body
PF: predicated region fallthrough
CT: control target
= control target key end

     0   :  { %vm29_vm0 = vcmask 261120   ;;  %vm130_vm1 = vcmask 260096   ;;  %s241_s1 = inlined_call_operand.vmem [shape: f32[32,32], index: 1, kind: input, shape index: {}]   ;;  %s242_s0 = inlined_call_operand.vmem [shape: f32[31,32], index: 0, kind: input, shape index: {}]   ;;  %s243_s2 = inlined_call_operand.vmem [shape: f32[1,32], index: 2, kind: input, shape index: {}]   ;;  %s244_s3 = inlined_call_operand.vmem [shape: f32[31,32], index: 3, kind: output, shape index: {}]  }
   0x1   :  { %v18_v0 = vld [vmem:[%s241_s1] sm:$0xff]  ;;  %v19_v1 = vld [vmem:[%s241_s1 + $0x8] sm:$0xff]  ;;  %v20_v2 = vld [vmem:[%s241_s1 + $0x10] sm:$0xff] }
   0x2   :  { %v163_v3 = vpack.c.bf16 %v19_v1, %v18_v0  ;;  %v21_v4 = vld [vmem:[%s241_s1 + $0x18] sm:$0xff]  ;;  %v14_v5 = vld [vmem:[%s242_s0] sm:$0xff]  ;;  %v16_v6 = vld [vmem:[%s242_s0 + $0x10] sm:$0xff] }
   0x3   :  { %v167_v7 = vpack.c.bf16 %v21_v4, %v20_v2  ;;  %157 = vmatprep.mubr.msk.f32.mxu0 %vm29_vm0, %v14_v5  ;;  %160 = vmatprep.mubr.msk.f32.mxu1 %vm29_vm0, %v16_v6  ;;  %v15_v8 = vld [vmem:[%s242_s0 + $0x8] sm:$0xff]  ;;  %v17_v9 = vld [vmem:[%s242_s0 + $0x18] sm:$0x7f]  ;;  %v136_v10 = vld [vmem:[%s243_s2] ss:$0 sm:$0xff] }
   0x4   :  { %164 = vmatprep.subr.bf16.mxu0 %v163_v3  ;;  %171 = vmatprep.subr.bf16.mxu1 %v163_v3 }
   0x5   :  { %166 = vmatpush3.bf16.msra.mxu0 %v163_v3  ;;  %173 = vmatpush3.bf16.msra.mxu1 %v163_v3 }
   0x6   :  { %168 = vmatprep.subr.bf16.mxu0 %v167_v7  ;;  %172 = vmatprep.subr.bf16.mxu1 %v167_v7 }
   0x9   :  { %170 = vmatpush3.bf16.msra.mxu0 %v167_v7  ;;  %174 = vmatpush3.bf16.msra.mxu1 %v167_v7 }
   0xc   :  { %158 = vmatmul.mubr.msk.f32.vlgmr.msra.gmra.mrb[0].mxu0 %vm29_vm0, %v15_v8  ;;  %161 = vmatmul.mubr.msk.f32.vlgmr.msra.gmra.mrb[0].mxu1 %vm29_vm0, %v17_v9 }
  0xdf   :  { %v159_v11 = vpop.f32.mrb[0].mxu0  ;;  %v162_v12 = vpop.f32.mrb[0].mxu1 }
  0xe0   :  { %v114_v13 = vadd.f32 %v159_v11, %v136_v10  ;;  %v124_v14 = vadd.f32 %v162_v12, %v136_v10  ;;  %v108_v15 = vpop.f32.mrb[1].mxu0  ;;  %v118_v16 = vpop.f32.mrb[1].mxu1 }
  0xe1   :  { %v109_v17 = vadd.f32 %v136_v10, %v108_v15  ;;  %v119_v18 = vadd.f32 %v136_v10, %v118_v16 }
  0xe2   :  { %128 = vst.msk [vmem:[%s244_s3 + $0x8] sm:$0xff] %vm29_vm0, %v114_v13 }
  0xe3   :  { %131 = vst.msk [vmem:[%s244_s3 + $0x18] sm:$0x7f] %vm130_vm1, %v124_v14 }
  0xe4   :  { %127 = vst.msk [vmem:[%s244_s3] sm:$0xff] %vm29_vm0, %v109_v17  ;;  %129 = vst.msk [vmem:[%s244_s3 + $0x10] sm:$0xff] %vm29_vm0, %v119_v18 }

// kernel: _lambda_.5
= control target key start
LH: loop header
LB: loop body
LE: loop exit
PB: predicated region body
PF: predicated region fallthrough
CT: control target
= control target key end

     0   :  { %vm29_vm0 = vcmask 261120   ;;  %vm127_vm1 = vcmask 523264   ;;  %s238_s1 = inlined_call_operand.vmem [shape: f32[32,64], index: 1, kind: input, shape index: {}]   ;;  %s239_s0 = inlined_call_operand.vmem [shape: f32[32,32], index: 0, kind: input, shape index: {}]   ;;  %s240_s2 = inlined_call_operand.vmem [shape: f32[1,64], index: 2, kind: input, shape index: {}]   ;;  %s241_s3 = inlined_call_operand.vmem [shape: f32[32,64], index: 3, kind: output, shape index: {}]  }
   0x1   :  { %v18_v0 = vld [vmem:[%s238_s1] sm:$0xff]  ;;  %v19_v1 = vld [vmem:[%s238_s1 + $0x8] sm:$0xff]  ;;  %v20_v2 = vld [vmem:[%s238_s1 + $0x10] sm:$0xff] }
   0x2   :  { %v163_v3 = vpack.c.bf16 %v19_v1, %v18_v0  ;;  %v21_v4 = vld [vmem:[%s238_s1 + $0x18] sm:$0xff]  ;;  %v14_v5 = vld [vmem:[%s239_s0] sm:$0xff]  ;;  %v16_v6 = vld [vmem:[%s239_s0 + $0x10] sm:$0xff] }
   0x3   :  { %v167_v7 = vpack.c.bf16 %v21_v4, %v20_v2  ;;  %157 = vmatprep.mubr.msk.f32.mxu0 %vm29_vm0, %v14_v5  ;;  %160 = vmatprep.mubr.msk.f32.mxu1 %vm29_vm0, %v16_v6  ;;  %v15_v8 = vld [vmem:[%s239_s0 + $0x8] sm:$0xff]  ;;  %v17_v9 = vld [vmem:[%s239_s0 + $0x18] sm:$0xff]  ;;  %v136_v10 = vld [vmem:[%s240_s2] ss:$0 sm:$0xff] }
   0x4   :  { %164 = vmatprep.subr.bf16.mxu0 %v163_v3  ;;  %171 = vmatprep.subr.bf16.mxu1 %v163_v3 }
   0x5   :  { %166 = vmatpush3.bf16.msra.mxu0 %v163_v3  ;;  %173 = vmatpush3.bf16.msra.mxu1 %v163_v3 }
   0x6   :  { %168 = vmatprep.subr.bf16.mxu0 %v167_v7  ;;  %172 = vmatprep.subr.bf16.mxu1 %v167_v7 }
   0x9   :  { %170 = vmatpush3.bf16.msra.mxu0 %v167_v7  ;;  %174 = vmatpush3.bf16.msra.mxu1 %v167_v7 }
   0xc   :  { %158 = vmatmul.mubr.msk.f32.vlgmr.msra.gmra.mrb[0].mxu0 %vm29_vm0, %v15_v8  ;;  %161 = vmatmul.mubr.msk.f32.vlgmr.msra.gmra.mrb[0].mxu1 %vm29_vm0, %v17_v9 }
  0xdf   :  { %v159_v11 = vpop.f32.mrb[0].mxu0  ;;  %v162_v12 = vpop.f32.mrb[0].mxu1 }
  0xe0   :  { %v114_v13 = vadd.f32 %v159_v11, %v136_v10  ;;  %v124_v14 = vadd.f32 %v162_v12, %v136_v10  ;;  %v108_v15 = vpop.f32.mrb[1].mxu0  ;;  %v118_v16 = vpop.f32.mrb[1].mxu1 }
  0xe1   :  { %v109_v17 = vadd.f32 %v136_v10, %v108_v15  ;;  %v119_v18 = vadd.f32 %v136_v10, %v118_v16 }
  0xe2   :  { %129 = vst.msk [vmem:[%s241_s3 + $0x8] sm:$0xff] %vm127_vm1, %v114_v13  ;;  %131 = vst.msk [vmem:[%s241_s3 + $0x18] sm:$0xff] %vm127_vm1, %v124_v14 }
  0xe3   :  { %128 = vst.msk [vmem:[%s241_s3] sm:$0xff] %vm127_vm1, %v109_v17  ;;  %130 = vst.msk [vmem:[%s241_s3 + $0x10] sm:$0xff] %vm127_vm1, %v119_v18 }

// kernel: _lambda_.9
= control target key start
LH: loop header
LB: loop body
LE: loop exit
PB: predicated region body
PF: predicated region fallthrough
CT: control target
= control target key end

     0   :  { %vm28_vm0 = vcmask 261120   ;;  %s243_s0 = inlined_call_operand.vmem [shape: f32[16,32], index: 0, kind: input, shape index: {}]   ;;  %s244_s1 = inlined_call_operand.vmem [shape: f32[32,32], index: 1, kind: input, shape index: {}]   ;;  %s245_s2 = inlined_call_operand.vmem [shape: f32[1,32], index: 2, kind: input, shape index: {}]   ;;  %s246_s3 = inlined_call_operand.hbm [shape: f32[16,32], index: 3, kind: output, shape index: {}]  }
   0x1   :  { %v17_v0 = vld [vmem:[%s244_s1] sm:$0xff]  ;;  %v18_v1 = vld [vmem:[%s244_s1 + $0x8] sm:$0xff]  ;;  %v19_v2 = vld [vmem:[%s244_s1 + $0x10] sm:$0xff] }
   0x2   :  { %v148_v3 = vpack.c.bf16 %v18_v1, %v17_v0  ;;  %v20_v4 = vld [vmem:[%s244_s1 + $0x18] sm:$0xff]  ;;  %v15_v5 = vld [vmem:[%s243_s0] sm:$0xff] }
   0x3   :  { %v152_v6 = vpack.c.bf16 %v20_v4, %v19_v2  ;;  %145 = vmatprep.mubr.msk.f32.mxu0 %vm28_vm0, %v15_v5 }
   0x4   :  { %8 = vsyncpa [#allocation3], 0  ;;  %149 = vmatprep.subr.bf16.mxu0 %v148_v3  ;;  %v16_v7 = vld [vmem:[%s243_s0 + $0x8] sm:$0xff]  ;;  %v128_v8 = vld [vmem:[%s245_s2] ss:$0 sm:$0xff]  ;;  %s183_s25 = smov [#allocation2]  }
   0x5   :  { %151 = vmatpush3.bf16.msra.mxu0 %v148_v3  ;;  %s117_s26 = sshll.u32 %s183_s25, 4  ;;  %s118_s26 = int_to_ptr.vmem [resolvable:$true] %s117_s26 }
   0x6   :  { %153 = vmatprep.subr.bf16.mxu0 %v152_v6  ;;  %s159_s27 = scalar_lea.vmem %s118_s26, 256  ;;  %p164_p1 = scmp.lt.s32.totalorder %s118_s26, %s118_s26 }
   0x7   :  { %p160_p0 = scmp.ne.s32.totalorder %s118_s26, %s159_s27  ;;  %p165_p2 = scmp.lt.s32.totalorder %s159_s27, %s159_s27 }
   0x9   :  { %155 = vmatpush3.bf16.msra.mxu0 %v152_v6  ;;  %p166_p3 = por %p165_p2, %p164_p1 }
   0xb   :  { %p167_p4 = pnand %p166_p3, %p160_p0 }
   0xc   :  { %146 = vmatmul.mubr.msk.f32.vlgmr.msra.gmra.mrb[0].mxu0 %vm28_vm0, %v16_v7 }
  0xdf   :  { %v147_v9 = vpop.f32.mrb[0].mxu0 }
  0xe0   :  { %v107_v10 = vadd.f32 %v147_v9, %v128_v8  ;;  %v101_v11 = vpop.f32.mrb[1].mxu0 }
  0xe1   :  { %v102_v12 = vadd.f32 %v128_v8, %v101_v11 }
  0xe2   :  { %111 = vst.msk [vmem:[#allocation2 + $0x8] sm:$0xff] %vm28_vm0, %v107_v10 }
  0xe3   :  { %110 = vst.msk [vmem:[#allocation2] sm:$0xff] %vm28_vm0, %v102_v12 }
  0xe4   :  { %170 = shalt.err (!%p167_p4)
}
  0xe5   :  { %s171_s28 = scalar_lea.hbm %s246_s3, 256 }
  0xe6   :  { %p172_p5 = scmp.ne.s32.totalorder %s246_s3, %s171_s28  ;;  %p175_p6 = scmp.lt.u32.totalorder %s171_s28, %s246_s3 }
  0xe8   :  { %p177_p7 = pnand %p175_p6, %p172_p5 }
  0xea   :  { %180 = shalt.err (!%p177_p7)
}
  0xeb   :  { %s184_s6 = smov 128   ;;  %s185_s7 = smov 8  }
  0xec   :  { %123 = dma.vmem_to_hbm [thread:$0]  %s118_s26, 256, %s246_s3, [#allocation3], %s184_s6, %s184_s6, %s185_s7  }
  0xed   :  { %181 = dma.done.wait [#allocation3], 256  }
  0xee   :  { %182 = vsyncadd [#allocation3], 4294967040 }
  0xef   :  { %127 = vsyncpa [#allocation3], 1 }

// kernel: _lambda_.8
= control target key start
LH: loop header
LB: loop body
LE: loop exit
PB: predicated region body
PF: predicated region fallthrough
CT: control target
= control target key end

     0   :  { %13 = vsyncpa [#allocation3], 0  ;;  %s2773_s0 = inlined_call_operand.vmem [shape: f32[2,8,32], index: 0, kind: input, shape index: {}]   ;;  %s2774_s1 = inlined_call_operand.vmem [shape: f32[2,16,32], index: 1, kind: input, shape index: {}]   ;;  %s2775_s2 = inlined_call_operand.vmem [shape: f32[2,16,32], index: 2, kind: input, shape index: {}]   ;;  %s2776_s3 = inlined_call_operand.vmem [shape: f32[128,32], index: 3, kind: input, shape index: {}]   ;;  %s2777_s4 = inlined_call_operand.vmem [shape: f32[2,4,16], index: 4, kind: input, shape index: {}]   ;;  %s2778_s5 = inlined_call_operand.vmem [shape: f32[4,128], index: 5, kind: input, shape index: {}]   ;;  %s2779_s6 = inlined_call_operand.vmem [shape: f32[2,8,32], index: 6, kind: output, shape index: {0}]   ;;  %s2780_s7 = inlined_call_operand.hbm [shape: f32[2,4,8,16], index: 7, kind: output, shape index: {1}]  }
   0x1   :  { %15 = vsyncpa [#allocation3 + $0x1], 0  ;;  %s2255_s24 = smov 0   ;;  %s2257_s25 = smov 0  }
   0x2   :  { %s2259_s26 = smov 0   ;;  %s2261_s27 = smov 0  }
   0x3   :  { %s2263_s28 = smov 0   ;;  %s2265_s29 = smov 0  }
   0x4 LB: > { %s1583_s30 = sadd.s32 4294967295, %s2201_s29   ;;  %s1584_s8 = sadd.s32 4294967294, %s2201_s29   ;;  %s2201_s29 = sphi %s2265_s29, %s21_s29   ;;  %s2197_s28 = sphi %s2263_s28, %s2789_s28   ;;  %s2193_s27 = sphi %s2261_s27, %s2788_s27   ;;  %s2189_s26 = sphi %s2259_s26, %s2787_s26   ;;  %s2185_s25 = sphi %s2257_s25, %s2786_s25   ;;  %s2181_s24 = sphi %s2255_s24, %s2785_s24  }
   0x5   : > { %s33_s9 = sadd.s32 1, %s2197_s28  ;;  %s218_s10 = sadd.s32 1, %s2189_s26 }
   0x6   : > { %p35_p0 = scmp.ge.s32.totalorder %s33_s9, 2  ;;  %p228_p1 = scmp.ne.s32.totalorder %s2189_s26, %s2185_s25 }
   0x7   : > { %p229_p2 = scmp.eq.s32.totalorder %s1583_s30, 1  ;;  %p234_p3 = scmp.ne.s32.totalorder %s2185_s25, %s2181_s24 }
   0x8   : > { %s2791_s9 = smov (%p35_p0, %s33_s9), 0  ;;  %p235_p5 = scmp.eq.s32.totalorder %s1584_s8, 1 }
   0x9   : > { %p2295_p4 = por %p229_p2, %p228_p1  ;;  %s213_s12 = ssub.s32 %s2197_s28, %s2791_s9 }
   0xa   : > { %p1587_p6 = scmp.ge.s32.totalorder %s2201_s29, 1  ;;  %p216_p7 = scmp.eq.s32.totalorder %s213_s12, 0 }
   0xb   : > { %p2302_p8 = por %p235_p5, %p234_p3  ;;  %p292_p9 = scmp.lt.s32.totalorder %s2201_s29, 3 }
   0xc   : > { %s2308_s14 = scalar_select %p216_p7, %s2189_s26, %s218_s10  }
   0xd   : > { %p293_p10 = pnand %p1587_p6, %p292_p9 }
   0xe   : > { %v380_v0 = vld [vmem:[%s2776_s3] sm:$0xff] (!%p293_p10)  ;;  %v381_v1 = vld [vmem:[%s2776_s3 + $0x8] sm:$0xff] (!%p293_p10)  ;;  %vm396_vm0 = vcmask (!%p293_p10), 64512   ;;  %v2203_v2 = vmov (!%p293_p10), 0.0|0.0   ;;  %v2204_v5 = vmov (!%p293_p10), 0.0   ;;  %v2331_v6 = vld [vmem:[%s2776_s3 + $0x10] sm:$0xff] (!%p293_p10) }
   0xf   : > { %296 = sbr.rel (%p293_p10) target bundleno = 3213 (0xc8d), region = 44  ;;  %1735 = vmatprep.subr.bf16.mxu0 (!%p293_p10), %v2203_v2  ;;  %v1736_v3 = vpack.c.bf16 (!%p293_p10), %v381_v1, %v380_v0  ;;  %vm2319_vm1 = vmpackc.low (!%p293_p10), %vm396_vm0, %vm396_vm0  ;;  %1771 = vmatprep.subr.bf16.mxu1 (!%p293_p10), %v2203_v2  ;;  %v2336_v7 = vld [vmem:[%s2776_s3 + $0x18] sm:$0xff] (!%p293_p10)  ;;  %v2346_v9 = vld [vmem:[%s2776_s3 + $0x20] sm:$0xff] (!%p293_p10)  ;;  %p347_p11 = scmp.lt.s32.totalorder (!%p293_p10), %s2193_s27, 1  ;;  %v2444_v31 = vpack.i.bf16 (!%p293_p10), %v381_v1, %v380_v0  ;;  %vm542_vm2 = vcmask (!%p293_p10), 130048   ;;  %vm2207_vm3 = vmmov (!%p293_p10), 0  }
  0x10   : > { %518 = vmatprep.mubr.f32.mxu0 (!%p293_p10), %v2204_v5  ;;  %v1740_v8 = vpack.c.bf16 (!%p293_p10), %v2336_v7, %v2331_v6  ;;  %v2351_v10 = vld [vmem:[%s2776_s3 + $0x28] sm:$0xff] (!%p293_p10)  ;;  %v2361_v12 = vld [vmem:[%s2776_s3 + $0x30] sm:$0xff] (!%p293_p10)  ;;  %v2366_v13 = vld [vmem:[%s2776_s3 + $0x38] sm:$0xff] (!%p293_p10)  ;;  %s2205_s18 = smov (!%p293_p10), 120   ;;  %s2206_s21 = smov (!%p293_p10), 625   ;;  %v2467_v47 = vpack.i.bf16 (!%p293_p10), %v2336_v7, %v2331_v6  ;;  %1711 = vmatprep.mubr.msk.f32.mxu1 (!%p293_p10), %vm2207_vm3, %v2204_v5 }
  0x11   : > { %1738 = vmatpush1.bf16.xpose.msk.msra.mxu0 (!%p293_p10), %vm2319_vm1, %v1736_v3  ;;  %v1744_v11 = vpack.c.bf16 (!%p293_p10), %v2351_v10, %v2346_v9  ;;  %v1748_v14 = vpack.c.bf16 (!%p293_p10), %v2366_v13, %v2361_v12  ;;  %v2376_v15 = vld [vmem:[%s2776_s3 + $0x40] sm:$0xff] (!%p293_p10)  ;;  %v2381_v16 = vld [vmem:[%s2776_s3 + $0x48] sm:$0xff] (!%p293_p10)  ;;  %v390_v18 = vld [vmem:[%s2776_s3 + $0x50] sm:$0xff] (!%p293_p10)  ;;  %1958 = vrot.lane.b32.xlu1 (!%p293_p10), %v2444_v31, %s2205_s18  ;;  %v2488_v51 = vpack.i.bf16 (!%p293_p10), %v2351_v10, %v2346_v9  ;;  %s2208_s15 = smov (!%p293_p10), 112  }
  0x12   : > { %1739 = vmatprep.subr.bf16.mxu0 (!%p293_p10), %v2203_v2  ;;  %v1752_v17 = vpack.c.bf16 (!%p293_p10), %v2381_v16, %v2376_v15  ;;  %v391_v19 = vld [vmem:[%s2776_s3 + $0x58] sm:$0xff] (!%p293_p10)  ;;  %v2400_v21 = vld [vmem:[%s2776_s3 + $0x60] sm:$0xff] (!%p293_p10)  ;;  %v2405_v22 = vld [vmem:[%s2776_s3 + $0x68] sm:$0xff] (!%p293_p10)  ;;  %v2495_v52 = vpack.i.bf16 (!%p293_p10), %v2366_v13, %v2361_v12  ;;  %v2501_v53 = vpack.i.bf16 (!%p293_p10), %v2381_v16, %v2376_v15 }
  0x13   : > { %v1756_v20 = vpack.c.bf16 (!%p293_p10), %v391_v19, %v390_v18  ;;  %v1760_v23 = vpack.c.bf16 (!%p293_p10), %v2405_v22, %v2400_v21  ;;  %v394_v24 = vld [vmem:[%s2776_s3 + $0x70] sm:$0xff] (!%p293_p10)  ;;  %v395_v25 = vld [vmem:[%s2776_s3 + $0x78] sm:$0xff] (!%p293_p10)  ;;  %v1615_v32 = vld [vmem:[%s2778_s5] ss:$0 sm:$0xff] (!%p293_p10)  ;;  %v2460_v41 = vpack.i.bf16 (!%p293_p10), %v391_v19, %v390_v18  ;;  %v2507_v54 = vpack.i.bf16 (!%p293_p10), %v2405_v22, %v2400_v21 }
  0x14   : > { %v1764_v26 = vpack.c.bf16 (!%p293_p10), %v395_v25, %v394_v24  ;;  %v2511_v55 = vpack.i.bf16 (!%p293_p10), %v395_v25, %v394_v24 }
  0x16   : > { %s2411_s17 = scalar_select %p347_p11, %s2193_s27, 1 }
  0x18   : > { %s1692_s22 = sshll.u32 %s2411_s17, 4  ;;  %s1589_s10 = sshll.u32 %s2411_s17, 3 }
  0x19   : > { %1742 = vmatpush1.bf16.xpose.msk.msra.mxu0 %vm2319_vm1, %v1740_v8  ;;  %s358_s8 = scalar_lea.vmem %s2774_s1, %s1692_s22  ;;  %s353_s16 = scalar_lea.vmem %s2773_s0, %s1589_s10 }
  0x1a   : > { %1743 = vmatprep.subr.bf16.mxu0 %v2203_v2  ;;  %v376_v27 = vld [vmem:[%s358_s8] sm:$0xff]  ;;  %v377_v28 = vld [vmem:[%s358_s8 + $0x8] sm:$0xff]  ;;  %s1594_s23 = sshll.u32 %s2411_s17, 2  ;;  %s363_s19 = scalar_lea.vmem %s2775_s2, %s1692_s22 }
  0x1b   : > { %v1768_v29 = vpack.c.bf16 %v377_v28, %v376_v27  ;;  %v2440_v30 = vld [vmem:[%s353_s16] sm:$0xff]  ;;  %s2456_s12 = scalar_lea.vmem %s2777_s4, %s1594_s23  ;;  %v2476_v49 = vld [vmem:[%s363_s19 + $0x8] sm:$0xff]  ;;  %v2515_v56 = vpack.i.bf16 %v377_v28, %v376_v27  ;;  %s344_s22 = sand.u32 1, %s2185_s25  }
  0x1c   : > { %v1616_v36 = vld [vmem:[%s2456_s12] ss:$0 sm:$0xff]  ;;  %s1588_s20 = sshll.u32 %s344_s22, 5  ;;  %s2210_s8 = smov 16  }
  0x1d   : > { %v2474_v48 = vld [vmem:[%s363_s19] sm:$0xff]  ;;  %s2524_s23 = scalar_lea.vmem [#allocation2], %s1588_s20  ;;  %s2209_s19 = smov 104  }
  0x1e   : > { %v1772_v50 = vpack.c.bf16 %v2476_v49, %v2474_v48  ;;  %s2718_s20 = scalar_lea.sflag [#allocation3], %s344_s22 }
  0x20   : > { %1773 = vmatpush3.bf16.msra.mxu1 %v1772_v50 }
  0x21   : > { %1746 = vmatpush1.bf16.xpose.msk.msra.mxu0 %vm2319_vm1, %v1744_v11  ;;  %1774 = vmatprep.subr.bf16.mxu1 %v2203_v2 }
  0x22   : > { %1747 = vmatprep.subr.bf16.mxu0 %v2203_v2 }
  0x29   : > { %1750 = vmatpush1.bf16.xpose.msk.msra.mxu0 %vm2319_vm1, %v1748_v14 }
  0x2a   : > { %1751 = vmatprep.subr.bf16.mxu0 %v2203_v2 }
  0x31   : > { %1754 = vmatpush1.bf16.xpose.msk.msra.mxu0 %vm2319_vm1, %v1752_v17 }
  0x32   : > { %1755 = vmatprep.subr.bf16.mxu0 %v2203_v2 }
  0x39   : > { %1758 = vmatpush1.bf16.xpose.msk.msra.mxu0 %vm2319_vm1, %v1756_v20 }
  0x3a   : > { %1759 = vmatprep.subr.bf16.mxu0 %v2203_v2 }
  0x41   : > { %1762 = vmatpush1.bf16.xpose.msk.msra.mxu0 %vm2319_vm1, %v1760_v23 }
  0x42   : > { %1763 = vmatprep.subr.bf16.mxu0 %v2203_v2 }
  0x49   : > { %1766 = vmatpush1.bf16.xpose.msk.msra.mxu0 %vm2319_vm1, %v1764_v26 }
  0x4a   : > { %1767 = vmatprep.subr.bf16.mxu0 %v2203_v2 }
  0x51   : > { %1770 = vmatpush1.bf16.xpose.msk.msra.mxu0 %vm2319_vm1, %v1768_v29 }
  0x52   : > { %1810 = vmatprep.subr.bf16.mxu0 %v2203_v2 }
  0x58   : > { %1614 = vmatmul.mubr.msk.f32.vlgmr.msra.gmra.mrb[0].mxu0 %vm396_vm0, %v2440_v30 }
  0x59   : > { %1718 = vmatprep.mubr.msk.f32.mxu0 %vm2207_vm3, %v2204_v5 }
  0x83   : > { %v1959_v57 = vpop.permute.xlu1 %1958 }
  0x84   : > { %v1961_v59 = vunpack.i.h.bf16 %v1959_v57  ;;  %v1960_v60 = vunpack.i.l.bf16 %v1959_v57 }
  0x86   : > { %v1775_v0 = vpack.c.bf16 %v1961_v59, %v1960_v60  ;;  %v2570_v59 = vpack.i.bf16 %v2476_v49, %v2474_v48 }
 0x12b   : > { %v520_v33 = vpop.f32.mrb[0].mxu0 }
 0x12c   : > { %v530_v34 = vadd.f32 %v1615_v32, %v520_v33  ;;  %v522_v35 = vpop.f32.mrb[1].mxu0 }
 0x12d   : > { %v536_v37 = vadd.f32 %v1616_v36, %v522_v35 }
 0x12e   : > { %539 = vrot.lane.b32.xlu0 %v530_v34, %s2206_s21 }
 0x1a0   : > { %v540_v38 = vpop.permute.xlu0 %539 }
 0x1a1   : > { %v541_v39 = vadd.f32 %v540_v38, %v536_v37 }
 0x1a3   : > { %v543_v40 = vsel %vm542_vm2, %v541_v39, -inf }
 0x1a4   : > { %544 = vmax.xlane.f32.xlu0 %v543_v40  ;;  %v1637_v40 = vld [vmem:[%s2778_s5 + $0x1] ss:$0 sm:$0xff] }
 0x1ba   : > { %1983 = vrot.lane.b32.xlu0 %v2460_v41, %s2205_s18 }
 0x231   : > { %v545_v42 = vpop.xlane.xlu0 %544 }
 0x232   : > { %v546_v43 = vsub.f32 %v541_v39, %v545_v42 }
 0x234   : > { %v547_v44 = vmul.f32 1.442695, %v546_v43 }
 0x235   : > { %v1984_v19 = vpop.permute.xlu0 %1983 }
 0x236   : > { %2107 = vpow2.f32 %v547_v44  ;;  %v1986_v20 = vunpack.i.h.bf16 %v1984_v19  ;;  %v1985_v21 = vunpack.i.l.bf16 %v1984_v19 }
 0x238   : > { %v1795_v22 = vpack.c.bf16 %v1986_v20, %v1985_v21 }
 0x240   : > { %v2108_v45 = vpop.eup %2107 }
 0x241   : > { %v549_v46 = vsel %vm542_vm2, %v2108_v45, 0.0 }
 0x242   : > { %550 = vadd.xlane.f32.xlu1 %v549_v46 }
 0x253   : > { %1963 = vrot.lane.b32.xlu1 %v2467_v47, %s2205_s18 }
 0x257   : > { %1968 = vrot.lane.b32.xlu1 %v2488_v51, %s2205_s18 }
 0x25b   : > { %1973 = vrot.lane.b32.xlu1 %v2495_v52, %s2205_s18 }
 0x25f   : > { %1978 = vrot.lane.b32.xlu1 %v2501_v53, %s2205_s18 }
 0x263   : > { %1988 = vrot.lane.b32.xlu1 %v2507_v54, %s2205_s18 }
 0x267   : > { %1993 = vrot.lane.b32.xlu1 %v2511_v55, %s2205_s18 }
 0x26b   : > { %1998 = vrot.lane.b32.xlu1 %v2515_v56, %s2205_s18 }
 0x26f   : > { %628 = vrot.lane.b32.xlu1 %v2440_v30, %s2205_s18 }
 0x2cf   : > { %v551_v58 = vpop.xlane.xlu1 %550 }
 0x2d0   : > { %2109 = vrcp.f32 %v551_v58 }
 0x2d3   : > { %v1964_v63 = vpop.permute.xlu1 %1963 }
 0x2d4   : > { %v1966_v1 = vunpack.i.h.bf16 %v1964_v63  ;;  %v1965_v3 = vunpack.i.l.bf16 %v1964_v63 }
 0x2d6   : > { %v1779_v6 = vpack.c.bf16 %v1966_v1, %v1965_v3 }
 0x2d7   : > { %v1969_v7 = vpop.permute.xlu1 %1968 }
 0x2d8   : > { %v1971_v8 = vunpack.i.h.bf16 %v1969_v7  ;;  %v1970_v9 = vunpack.i.l.bf16 %v1969_v7 }
 0x2da   : > { %v2110_v61 = vpop.eup %2109  ;;  %v1783_v10 = vpack.c.bf16 %v1971_v8, %v1970_v9 }
 0x2db   : > { %v553_v62 = vmul.f32 %v2110_v61, %v2108_v45  ;;  %v1974_v11 = vpop.permute.xlu1 %1973  ;;  %v1638_v45 = vld [vmem:[%s2456_s12 + $0x1] ss:$0 sm:$0xff] }
 0x2dc   : > { %v1976_v12 = vunpack.i.h.bf16 %v1974_v11  ;;  %v1975_v13 = vunpack.i.l.bf16 %v1974_v11 }
 0x2dd   : > { %554 = vst.msk [vmem:[%s2524_s23] sm:$0xff] %vm542_vm2, %v553_v62  ;;  %1712 = vmatmul.mubr.msk.f32.vlgmr.msra.gmra.mrb[0].mxu1 %vm542_vm2, %v553_v62 }
 0x2de   : > { %1777 = vmatpush1.bf16.xpose.msk.msra.mxu1 %vm2319_vm1, %v1775_v0  ;;  %768 = vmatprep.mubr.f32.mxu1 %v2204_v5  ;;  %v1787_v14 = vpack.c.bf16 %v1976_v12, %v1975_v13 }
 0x2df   : > { %1778 = vmatprep.subr.bf16.mxu1 %v2203_v2  ;;  %v1979_v15 = vpop.permute.xlu1 %1978 }
 0x2e0   : > { %v1981_v16 = vunpack.i.h.bf16 %v1979_v15  ;;  %v1980_v17 = vunpack.i.l.bf16 %v1979_v15 }
 0x2e2   : > { %v1791_v18 = vpack.c.bf16 %v1981_v16, %v1980_v17 }
 0x2e3   : > { %v1989_v23 = vpop.permute.xlu1 %1988 }
 0x2e4   : > { %v1991_v24 = vunpack.i.h.bf16 %v1989_v23  ;;  %v1990_v25 = vunpack.i.l.bf16 %v1989_v23 }
 0x2e6   : > { %1781 = vmatpush1.bf16.xpose.msk.msra.mxu1 %vm2319_vm1, %v1779_v6  ;;  %v1799_v26 = vpack.c.bf16 %v1991_v24, %v1990_v25 }
 0x2e7   : > { %1782 = vmatprep.subr.bf16.mxu1 %v2203_v2  ;;  %v1994_v27 = vpop.permute.xlu1 %1993 }
 0x2e8   : > { %v1996_v28 = vunpack.i.h.bf16 %v1994_v27  ;;  %v1995_v29 = vunpack.i.l.bf16 %v1994_v27 }
 0x2ea   : > { %v1803_v32 = vpack.c.bf16 %v1996_v28, %v1995_v29 }
 0x2eb   : > { %v1999_v33 = vpop.permute.xlu1 %1998 }
 0x2ec   : > { %v2001_v34 = vunpack.i.h.bf16 %v1999_v33  ;;  %v2000_v35 = vunpack.i.l.bf16 %v1999_v33 }
 0x2ee   : > { %1785 = vmatpush1.bf16.xpose.msk.msra.mxu1 %vm2319_vm1, %v1783_v10  ;;  %v1807_v36 = vpack.c.bf16 %v2001_v34, %v2000_v35 }
 0x2ef   : > { %1786 = vmatprep.subr.bf16.mxu1 %v2203_v2  ;;  %v629_v37 = vpop.permute.xlu1 %628 }
 0x2f6   : > { %1789 = vmatpush1.bf16.xpose.msk.msra.mxu1 %vm2319_vm1, %v1787_v14 }
 0x2f7   : > { %1790 = vmatprep.subr.bf16.mxu1 %v2203_v2 }
 0x2fe   : > { %1793 = vmatpush1.bf16.xpose.msk.msra.mxu1 %vm2319_vm1, %v1791_v18 }
 0x2ff   : > { %1794 = vmatprep.subr.bf16.mxu1 %v2203_v2 }
 0x306   : > { %1797 = vmatpush1.bf16.xpose.msk.msra.mxu1 %vm2319_vm1, %v1795_v22 }
 0x307   : > { %1798 = vmatprep.subr.bf16.mxu1 %v2203_v2 }
 0x30e   : > { %1801 = vmatpush1.bf16.xpose.msk.msra.mxu1 %vm2319_vm1, %v1799_v26 }
 0x30f   : > { %1802 = vmatprep.subr.bf16.mxu1 %v2203_v2 }
 0x316   : > { %1805 = vmatpush1.bf16.xpose.msk.msra.mxu1 %vm2319_vm1, %v1803_v32 }
 0x317   : > { %1806 = vmatprep.subr.bf16.mxu1 %v2203_v2 }
 0x31e   : > { %1809 = vmatpush1.bf16.xpose.msk.msra.mxu1 %vm2319_vm1, %v1807_v36 }
 0x31f   : > { %1849 = vmatprep.subr.bf16.mxu1 %v2203_v2 }
 0x325   : > { %1636 = vmatmul.mubr.msk.f32.vlgmr.msra.gmra.mrb[2].mxu1 %vm396_vm0, %v629_v37 }
 0x326   : > { %1725 = vmatprep.mubr.msk.f32.mxu1 %vm2207_vm3, %v2204_v5 }
 0x3b0   : > { %v2560_v38 = vpop.f32.mrb[0].mxu1 }
 0x3b1   : > { %v1713_v39 = vpop.f32.mrb[1].mxu1 }
 0x3f8   : > { %v770_v42 = vpop.f32.mrb[2].mxu1 }
 0x3f9   : > { %v780_v43 = vadd.f32 %v1637_v40, %v770_v42  ;;  %v772_v44 = vpop.f32.mrb[3].mxu1 }
 0x3fa   : > { %v786_v46 = vadd.f32 %v1638_v45, %v772_v44 }
 0x3fb   : > { %789 = vrot.lane.b32.xlu1 %v780_v43, %s2206_s21 }
 0x46d   : > { %v790_v50 = vpop.permute.xlu1 %789 }
 0x46e   : > { %v791_v57 = vadd.f32 %v790_v50, %v786_v46 }
 0x470   : > { %v792_v58 = vsel %vm542_vm2, %v791_v57, -inf }
 0x471   : > { %793 = vmax.xlane.f32.xlu0 %v792_v58 }
 0x487   : > { %2003 = vrot.lane.b32.xlu0 %v2570_v59, %s2205_s18 }
 0x48b   : > { %2013 = vrot.lane.b32.xlu0 %v2467_v47, %s2208_s15 }
 0x48f   : > { %2023 = vrot.lane.b32.xlu0 %v2495_v52, %s2208_s15 }
 0x493   : > { %2033 = vrot.lane.b32.xlu0 %v2460_v41, %s2208_s15 }
 0x497   : > { %2043 = vrot.lane.b32.xlu0 %v2511_v55, %s2208_s15 }
 0x49b   : > { %886 = vrot.lane.b32.xlu0 %v2440_v30, %s2208_s15 }
 0x4fe   : > { %v794_v48 = vpop.xlane.xlu0 %793 }
 0x4ff   : > { %v795_v49 = vsub.f32 %v791_v57, %v794_v48 }
 0x501   : > { %v796_v60 = vmul.f32 1.442695, %v795_v49 }
 0x502   : > { %v2004_v63 = vpop.permute.xlu0 %2003 }
 0x503   : > { %2111 = vpow2.f32 %v796_v60  ;;  %v2006_v0 = vunpack.i.h.bf16 %v2004_v63  ;;  %v2005_v1 = vunpack.i.l.bf16 %v2004_v63  ;;  %v1660_v60 = vld [vmem:[%s2778_s5 + $0x2] ss:$0 sm:$0xff] }
 0x505   : > { %v1811_v3 = vpack.c.bf16 %v2006_v0, %v2005_v1  ;;  %v1661_v0 = vld [vmem:[%s2456_s12 + $0x2] ss:$0 sm:$0xff] }
 0x506   : > { %v2014_v13 = vpop.permute.xlu0 %2013 }
 0x507   : > { %1812 = vmatpush3.bf16.msra.mxu0 %v1811_v3  ;;  %v2016_v14 = vunpack.i.h.bf16 %v2014_v13  ;;  %v2015_v15 = vunpack.i.l.bf16 %v2014_v13 }
 0x508   : > { %1813 = vmatprep.subr.bf16.mxu0 %v2203_v2 }
 0x509   : > { %v1818_v16 = vpack.c.bf16 %v2016_v14, %v2015_v15 }
 0x50a   : > { %v2024_v21 = vpop.permute.xlu0 %2023 }
 0x50b   : > { %v2026_v22 = vunpack.i.h.bf16 %v2024_v21  ;;  %v2025_v23 = vunpack.i.l.bf16 %v2024_v21 }
 0x50d   : > { %v2112_v61 = vpop.eup %2111  ;;  %v1826_v24 = vpack.c.bf16 %v2026_v22, %v2025_v23 }
 0x50e   : > { %v798_v62 = vsel %vm542_vm2, %v2112_v61, 0.0  ;;  %v2034_v29 = vpop.permute.xlu0 %2033 }
 0x50f   : > { %799 = vadd.xlane.f32.xlu1 %v798_v62  ;;  %v2036_v32 = vunpack.i.h.bf16 %v2034_v29  ;;  %v2035_v33 = vunpack.i.l.bf16 %v2034_v29 }
 0x511   : > { %v1834_v34 = vpack.c.bf16 %v2036_v32, %v2035_v33 }
 0x512   : > { %v2044_v40 = vpop.permute.xlu0 %2043 }
 0x513   : > { %v2046_v42 = vunpack.i.h.bf16 %v2044_v40  ;;  %v2045_v43 = vunpack.i.l.bf16 %v2044_v40 }
 0x515   : > { %v1842_v44 = vpack.c.bf16 %v2046_v42, %v2045_v43 }
 0x516   : > { %v887_v58 = vpop.permute.xlu0 %886 }
 0x520   : > { %2008 = vrot.lane.b32.xlu1 %v2444_v31, %s2208_s15 }
 0x524   : > { %2018 = vrot.lane.b32.xlu1 %v2488_v51, %s2208_s15 }
 0x528   : > { %2028 = vrot.lane.b32.xlu1 %v2501_v53, %s2208_s15 }
 0x52c   : > { %2038 = vrot.lane.b32.xlu1 %v2507_v54, %s2208_s15 }
 0x530   : > { %2048 = vrot.lane.b32.xlu1 %v2515_v56, %s2208_s15 }
 0x59c   : > { %v800_v6 = vpop.xlane.xlu1 %799 }
 0x59d   : > { %2113 = vrcp.f32 %v800_v6 }
 0x5a0   : > { %v2009_v7 = vpop.permute.xlu1 %2008 }
 0x5a1   : > { %v2011_v8 = vunpack.i.h.bf16 %v2009_v7  ;;  %v2010_v9 = vunpack.i.l.bf16 %v2009_v7 }
 0x5a3   : > { %v1814_v11 = vpack.c.bf16 %v2011_v8, %v2010_v9 }
 0x5a4   : > { %v2019_v17 = vpop.permute.xlu1 %2018 }
 0x5a5   : > { %v2021_v18 = vunpack.i.h.bf16 %v2019_v17  ;;  %v2020_v19 = vunpack.i.l.bf16 %v2019_v17 }
 0x5a7   : > { %v2114_v10 = vpop.eup %2113  ;;  %v1822_v20 = vpack.c.bf16 %v2021_v18, %v2020_v19 }
 0x5a8   : > { %v802_v12 = vmul.f32 %v2114_v10, %v2112_v61  ;;  %v2029_v25 = vpop.permute.xlu1 %2028 }
 0x5a9   : > { %v2031_v26 = vunpack.i.h.bf16 %v2029_v25  ;;  %v2030_v27 = vunpack.i.l.bf16 %v2029_v25 }
 0x5aa   : > { %1639 = vst.msk [vmem:[%s2524_s23 + $0x8] sm:$0xff] %vm542_vm2, %v802_v12  ;;  %1719 = vmatmul.mubr.msk.f32.vlgmr.msra.gmra.mrb[2].mxu0 %vm542_vm2, %v802_v12 }
 0x5ab   : > { %1816 = vmatpush1.bf16.xpose.msk.msra.mxu0 %vm2319_vm1, %v1814_v11  ;;  %1026 = vmatprep.mubr.f32.mxu0 %v2204_v5  ;;  %v1830_v28 = vpack.c.bf16 %v2031_v26, %v2030_v27 }
 0x5ac   : > { %1817 = vmatprep.subr.bf16.mxu0 %v2203_v2  ;;  %v2039_v35 = vpop.permute.xlu1 %2038 }
 0x5ad   : > { %v2041_v36 = vunpack.i.h.bf16 %v2039_v35  ;;  %v2040_v37 = vunpack.i.l.bf16 %v2039_v35 }
 0x5af   : > { %v1838_v39 = vpack.c.bf16 %v2041_v36, %v2040_v37 }
 0x5b0   : > { %v2049_v45 = vpop.permute.xlu1 %2048 }
 0x5b1   : > { %v2051_v46 = vunpack.i.h.bf16 %v2049_v45  ;;  %v2050_v50 = vunpack.i.l.bf16 %v2049_v45 }
 0x5b3   : > { %1820 = vmatpush1.bf16.xpose.msk.msra.mxu0 %vm2319_vm1, %v1818_v16  ;;  %v1846_v57 = vpack.c.bf16 %v2051_v46, %v2050_v50 }
 0x5b4   : > { %1821 = vmatprep.subr.bf16.mxu0 %v2203_v2 }
 0x5bb   : > { %1824 = vmatpush1.bf16.xpose.msk.msra.mxu0 %vm2319_vm1, %v1822_v20 }
 0x5bc   : > { %1825 = vmatprep.subr.bf16.mxu0 %v2203_v2 }
 0x5c3   : > { %1828 = vmatpush1.bf16.xpose.msk.msra.mxu0 %vm2319_vm1, %v1826_v24 }
 0x5c4   : > { %1829 = vmatprep.subr.bf16.mxu0 %v2203_v2 }
 0x5cb   : > { %1832 = vmatpush1.bf16.xpose.msk.msra.mxu0 %vm2319_vm1, %v1830_v28 }
 0x5cc   : > { %1833 = vmatprep.subr.bf16.mxu0 %v2203_v2 }
 0x5d3   : > { %1836 = vmatpush1.bf16.xpose.msk.msra.mxu0 %vm2319_vm1, %v1834_v34 }
 0x5d4   : > { %1837 = vmatprep.subr.bf16.mxu0 %v2203_v2 }
 0x5db   : > { %1840 = vmatpush1.bf16.xpose.msk.msra.mxu0 %vm2319_vm1, %v1838_v39 }
 0x5dc   : > { %1841 = vmatprep.subr.bf16.mxu0 %v2203_v2 }
 0x5e3   : > { %1844 = vmatpush1.bf16.xpose.msk.msra.mxu0 %vm2319_vm1, %v1842_v44 }
 0x5e4   : > { %1845 = vmatprep.subr.bf16.mxu0 %v2203_v2 }
 0x5eb   : > { %1848 = vmatpush1.bf16.xpose.msk.msra.mxu0 %vm2319_vm1, %v1846_v57 }
 0x5ec   : > { %1888 = vmatprep.subr.bf16.mxu0 %v2203_v2 }
 0x5f2   : > { %1659 = vmatmul.mubr.msk.f32.vlgmr.msra.gmra.mrb[4].mxu0 %vm396_vm0, %v887_v58 }
 0x5f3   : > { %1732 = vmatprep.mubr.msk.f32.mxu0 %vm2207_vm3, %v2204_v5 }
 0x67d   : > { %v2630_v48 = vpop.f32.mrb[2].mxu0 }
 0x67e   : > { %v1720_v49 = vpop.f32.mrb[3].mxu0 }
 0x6c5   : > { %v1028_v61 = vpop.f32.mrb[4].mxu0 }
 0x6c6   : > { %v1038_v62 = vadd.f32 %v1660_v60, %v1028_v61  ;;  %v1030_v63 = vpop.f32.mrb[5].mxu0  ;;  %v1683_v61 = vld [vmem:[%s2778_s5 + $0x3] ss:$0 sm:$0xff] }
 0x6c7   : > { %v1044_v1 = vadd.f32 %v1661_v0, %v1030_v63 }
 0x6c8   : > { %1047 = vrot.lane.b32.xlu1 %v1038_v62, %s2206_s21 }
 0x73a   : > { %v1048_v3 = vpop.permute.xlu1 %1047 }
 0x73b   : > { %v1049_v6 = vadd.f32 %v1048_v3, %v1044_v1  ;;  %v1684_v1 = vld [vmem:[%s2456_s12 + $0x3] ss:$0 sm:$0xff]  ;;  %s1694_s12 = sshll.u32 %s2193_s27, 9  ;;  %s2212_s27 = smov [#allocation2]  }
 0x73d   : > { %v1050_v7 = vsel %vm542_vm2, %v1049_v6, -inf }
 0x73e   : > { %1051 = vmax.xlane.f32.xlu0 %v1050_v7 }
 0x754   : > { %2053 = vrot.lane.b32.xlu0 %v2570_v59, %s2208_s15  ;;  %s1441_s15 = sshll.u32 %s2524_s23, 4  ;;  %s2714_s15 = int_to_ptr.vmem [resolvable:$true] %s1441_s15 }
 0x755   : > { %s2123_s30 = scalar_lea.vmem %s2714_s15, 512 }
 0x756   : > { %p2124_p12 = scmp.ne.s32.totalorder %s2714_s15, %s2123_s30 }
 0x758   : > { %2063 = vrot.lane.b32.xlu0 %v2467_v47, %s2209_s19  ;;  %p2125_p13 = pnand %p2124_p12, %p2295_p4 }
 0x75a   : > { %p2126_p0 = pneg %p2125_p13 }
 0x75c   : > { %2073 = vrot.lane.b32.xlu0 %v2495_v52, %s2209_s19 }
 0x760   : > { %2083 = vrot.lane.b32.xlu0 %v2460_v41, %s2209_s19 }
 0x764   : > { %2093 = vrot.lane.b32.xlu0 %v2511_v55, %s2209_s19 }
 0x768   : > { %1142 = vrot.lane.b32.xlu0 %v2440_v30, %s2209_s19 }
 0x7cb   : > { %v1052_v8 = vpop.xlane.xlu0 %1051 }
 0x7cc   : > { %v1053_v9 = vsub.f32 %v1049_v6, %v1052_v8 }
 0x7ce   : > { %v1054_v10 = vmul.f32 1.442695, %v1053_v9 }
 0x7cf   : > { %v2054_v47 = vpop.permute.xlu0 %2053 }
 0x7d0   : > { %2115 = vpow2.f32 %v1054_v10  ;;  %v2056_v13 = vunpack.i.h.bf16 %v2054_v47  ;;  %v2055_v52 = vunpack.i.l.bf16 %v2054_v47 }
 0x7d2   : > { %v1850_v14 = vpack.c.bf16 %v2056_v13, %v2055_v52 }
 0x7d3   : > { %v2064_v18 = vpop.permute.xlu0 %2063 }
 0x7d4   : > { %1851 = vmatpush3.bf16.msra.mxu1 %v1850_v14 }
 0x7d5   : > { %1852 = vmatprep.subr.bf16.mxu1 %v2203_v2 }
 0x7d7   : > { %v2074_v22 = vpop.permute.xlu0 %2073 }
 0x7d8   : > { %v2076_v23 = vunpack.i.h.bf16 %v2074_v22  ;;  %v2075_v24 = vunpack.i.l.bf16 %v2074_v22 }
 0x7da   : > { %v2116_v11 = vpop.eup %2115 }
 0x7db   : > { %v1056_v12 = vsel %vm542_vm2, %v2116_v11, 0.0  ;;  %v2084_v29 = vpop.permute.xlu0 %2083 }
 0x7dc   : > { %1057 = vadd.xlane.f32.xlu1 %v1056_v12  ;;  %v2086_v32 = vunpack.i.h.bf16 %v2084_v29  ;;  %v2085_v33 = vunpack.i.l.bf16 %v2084_v29 }
 0x7de   : > { %v1873_v34 = vpack.c.bf16 %v2086_v32, %v2085_v33 }
 0x7df   : > { %v2094_v40 = vpop.permute.xlu0 %2093 }
 0x7e0   : > { %v2096_v42 = vunpack.i.h.bf16 %v2094_v40  ;;  %v2095_v43 = vunpack.i.l.bf16 %v2094_v40 }
 0x7e2   : > { %v1881_v44 = vpack.c.bf16 %v2096_v42, %v2095_v43 }
 0x7e3   : > { %v1143_v58 = vpop.permute.xlu0 %1142 }
 0x7ed   : > { %2058 = vrot.lane.b32.xlu1 %v2444_v31, %s2209_s19 }
 0x7f1   : > { %2068 = vrot.lane.b32.xlu1 %v2488_v51, %s2209_s19  ;;  %v2066_v51 = vunpack.i.h.bf16 %v2064_v18 }
 0x7f5   : > { %2078 = vrot.lane.b32.xlu1 %v2501_v53, %s2209_s19  ;;  %v2065_v53 = vunpack.i.l.bf16 %v2064_v18 }
 0x7f9   : > { %2088 = vrot.lane.b32.xlu1 %v2507_v54, %s2209_s19  ;;  %v1857_v54 = vpack.c.bf16 %v2066_v51, %v2065_v53 }
 0x7fd   : > { %2098 = vrot.lane.b32.xlu1 %v2515_v56, %s2209_s19 }
 0x869   : > { %v1058_v30 = vpop.xlane.xlu1 %1057 }
 0x86a   : > { %2117 = vrcp.f32 %v1058_v30 }
 0x86d   : > { %v2059_v41 = vpop.permute.xlu1 %2058 }
 0x86e   : > { %v2061_v31 = vunpack.i.h.bf16 %v2059_v41  ;;  %v2060_v55 = vunpack.i.l.bf16 %v2059_v41 }
 0x870   : > { %v1853_v16 = vpack.c.bf16 %v2061_v31, %v2060_v55 }
 0x871   : > { %v2069_v56 = vpop.permute.xlu1 %2068 }
 0x872   : > { %v2071_v19 = vunpack.i.h.bf16 %v2069_v56  ;;  %v2070_v20 = vunpack.i.l.bf16 %v2069_v56 }
 0x874   : > { %v2118_v15 = vpop.eup %2117  ;;  %v1861_v21 = vpack.c.bf16 %v2071_v19, %v2070_v20 }
 0x875   : > { %v1060_v17 = vmul.f32 %v2118_v15, %v2116_v11  ;;  %v2079_v25 = vpop.permute.xlu1 %2078 }
 0x876   : > { %v2081_v26 = vunpack.i.h.bf16 %v2079_v25  ;;  %v2080_v27 = vunpack.i.l.bf16 %v2079_v25 }
 0x877   : > { %1662 = vst.msk [vmem:[%s2524_s23 + $0x10] sm:$0xff] %vm542_vm2, %v1060_v17  ;;  %1726 = vmatmul.mubr.msk.f32.vlgmr.msra.gmra.mrb[4].mxu1 %vm542_vm2, %v1060_v17 }
 0x878   : > { %1855 = vmatpush1.bf16.xpose.msk.msra.mxu1 %vm2319_vm1, %v1853_v16  ;;  %1282 = vmatprep.mubr.f32.mxu1 %v2204_v5  ;;  %v1865_v5 = vpack.c.bf16 %v2076_v23, %v2075_v24  ;;  %v1869_v28 = vpack.c.bf16 %v2081_v26, %v2080_v27 }
 0x879   : > { %1856 = vmatprep.subr.bf16.mxu1 %v2203_v2  ;;  %v2089_v35 = vpop.permute.xlu1 %2088 }
 0x87a   : > { %v2091_v36 = vunpack.i.h.bf16 %v2089_v35  ;;  %v2090_v37 = vunpack.i.l.bf16 %v2089_v35 }
 0x87c   : > { %v1877_v39 = vpack.c.bf16 %v2091_v36, %v2090_v37 }
 0x87d   : > { %v2099_v45 = vpop.permute.xlu1 %2098 }
 0x87e   : > { %v2101_v46 = vunpack.i.h.bf16 %v2099_v45  ;;  %v2100_v50 = vunpack.i.l.bf16 %v2099_v45 }
 0x880   : > { %1859 = vmatpush1.bf16.xpose.msk.msra.mxu1 %vm2319_vm1, %v1857_v54  ;;  %v1885_v57 = vpack.c.bf16 %v2101_v46, %v2100_v50 }
 0x881   : > { %1860 = vmatprep.subr.bf16.mxu1 %v2203_v2 }
 0x888   : > { %1863 = vmatpush1.bf16.xpose.msk.msra.mxu1 %vm2319_vm1, %v1861_v21 }
 0x889   : > { %1864 = vmatprep.subr.bf16.mxu1 %v2203_v2 }
 0x890   : > { %1867 = vmatpush1.bf16.xpose.msk.msra.mxu1 %vm2319_vm1, %v1865_v5 }
 0x891   : > { %1868 = vmatprep.subr.bf16.mxu1 %v2203_v2 }
 0x898   : > { %1871 = vmatpush1.bf16.xpose.msk.msra.mxu1 %vm2319_vm1, %v1869_v28 }
 0x899   : > { %1872 = vmatprep.subr.bf16.mxu1 %v2203_v2 }
 0x8a0   : > { %1875 = vmatpush1.bf16.xpose.msk.msra.mxu1 %vm2319_vm1, %v1873_v34 }
 0x8a1   : > { %1876 = vmatprep.subr.bf16.mxu1 %v2203_v2 }
 0x8a8   : > { %1879 = vmatpush1.bf16.xpose.msk.msra.mxu1 %vm2319_vm1, %v1877_v39 }
 0x8a9   : > { %1880 = vmatprep.subr.bf16.mxu1 %v2203_v2 }
 0x8b0   : > { %1883 = vmatpush1.bf16.xpose.msk.msra.mxu1 %vm2319_vm1, %v1881_v44 }
 0x8b1   : > { %1884 = vmatprep.subr.bf16.mxu1 %v2203_v2 }
 0x8b8   : > { %1887 = vmatpush1.bf16.xpose.msk.msra.mxu1 %vm2319_vm1, %v1885_v57 }
 0x8bf   : > { %1682 = vmatmul.mubr.msk.f32.vlgmr.msra.gmra.mrb[6].mxu1 %vm396_vm0, %v1143_v58 }
 0x94a   : > { %v1138_v49 = vpop.f32.mrb[4].mxu1 }
 0x94b   : > { %v1727_v60 = vpop.f32.mrb[5].mxu1 }
 0x992   : > { %v1284_v62 = vpop.f32.mrb[6].mxu1 }
 0x993   : > { %v1294_v63 = vadd.f32 %v1683_v61, %v1284_v62  ;;  %v1286_v0 = vpop.f32.mrb[7].mxu1 }
 0x994   : > { %v1300_v2 = vadd.f32 %v1684_v1, %v1286_v0 }
 0x995   : > { %1303 = vrot.lane.b32.xlu1 %v1294_v63, %s2206_s21  ;;  %s2211_s21 = smov 8  }
 0xa07   : > { %v1304_v3 = vpop.permute.xlu1 %1303 }
 0xa08   : > { %v1305_v6 = vadd.f32 %v1304_v3, %v1300_v2 }
 0xa0a   : > { %v1306_v4 = vsel %vm542_vm2, %v1305_v6, -inf }
 0xa0b   : > { %1307 = vmax.xlane.f32.xlu0 %v1306_v4 }
 0xa21   : > { %2103 = vrot.lane.b32.xlu0 %v2570_v59, %s2209_s19  ;;  %s2712_s19 = scalar_lea.hbm %s2780_s7, %s1694_s12 }
 0xa25   : > { %1403 = vrot.lane.b32.xlu0 %v1138_v49, %s2210_s8 }
 0xa98   : > { %v1308_v7 = vpop.xlane.xlu0 %1307 }
 0xa99   : > { %v1309_v8 = vsub.f32 %v1305_v6, %v1308_v7 }
 0xa9b   : > { %v1310_v9 = vmul.f32 1.442695, %v1309_v8 }
 0xa9c   : > { %v2104_v10 = vpop.permute.xlu0 %2103 }
 0xa9d   : > { %2119 = vpow2.f32 %v1310_v9  ;;  %v2106_v11 = vunpack.i.h.bf16 %v2104_v10  ;;  %v2105_v12 = vunpack.i.l.bf16 %v2104_v10 }
 0xa9f   : > { %v1889_v47 = vpack.c.bf16 %v2106_v11, %v2105_v12 }
 0xaa1   : > { %1890 = vmatpush3.bf16.msra.mxu0 %v1889_v47 }
 0xaa7   : > { %v2120_v13 = vpop.eup %2119 }
 0xaa8   : > { %v1312_v52 = vsel %vm542_vm2, %v2120_v13, 0.0 }
 0xaa9   : > { %1313 = vadd.xlane.f32.xlu1 %v1312_v52 }
 0xaba   : > { %1399 = vrot.lane.b32.xlu1 %v2630_v48, %s2211_s21 }
 0xb36   : > { %v1314_v59 = vpop.xlane.xlu1 %1313 }
 0xb37   : > { %2121 = vrcp.f32 %v1314_v59 }
 0xb41   : > { %v2122_v14 = vpop.eup %2121 }
 0xb42   : > { %v1316_v30 = vmul.f32 %v2122_v14, %v2120_v13 }
 0xb44   : > { %1685 = vst.msk [vmem:[%s2524_s23 + $0x18] sm:$0xff] %vm542_vm2, %v1316_v30  ;;  %1733 = vmatmul.mubr.msk.f32.vlgmr.msra.gmra.mrb[6].mxu0 %vm542_vm2, %v1316_v30  ;;  %s2127_s23 = sshll.u32 %s2212_s27, 4  ;;  %s2128_s23 = int_to_ptr.vmem [resolvable:$false] %s2127_s23 }
 0xb45   : > { %s2129_s8 = scalar_lea.vmem %s2128_s23, 1024  ;;  %p2130_p1 = scmp.lt.s32.totalorder %s2714_s15, %s2128_s23 }
 0xb46   : > { %p2131_p2 = scmp.lt.s32.totalorder %s2129_s8, %s2123_s30 }
 0xb48   : > { %p2132_p3 = por %p2131_p2, %p2130_p1 }
 0xb4a   : > { %p2133_p5 = pnand %p2132_p3, %p2126_p0 }
 0xb4c   : > { %2136 = shalt.err (!%p2133_p5)
}
 0xb4d   : > { %s2137_s22 = scalar_lea.hbm %s2712_s19, 512  ;;  %s2141_s16 = scalar_lea.hbm %s2780_s7, 1024 }
 0xb4e   : > { %p2138_p6 = scmp.ne.s32.totalorder %s2712_s19, %s2137_s22  ;;  %p2142_p10 = scmp.lt.u32.totalorder %s2712_s19, %s2780_s7 }
 0xb4f   : > { %p2143_p11 = scmp.lt.u32.totalorder %s2141_s16, %s2137_s22  ;;  %p2145_p13 = scmp.lt.u32.totalorder %s2137_s22, %s2712_s19 }
 0xb50   : > { %p2139_p7 = pnand %p2138_p6, %p2295_p4 }
 0xb51   : > { %p2144_p12 = por %p2143_p11, %p2142_p10 }
 0xb52   : > { %p2140_p9 = pneg %p2139_p7 }
 0xb53   : > { %p2146_p0 = por %p2145_p13, %p2144_p12 }
 0xb55   : > { %p2147_p1 = pnand %p2146_p0, %p2140_p9 }
 0xb57   : > { %2150 = shalt.err (!%p2147_p1)
}
 0xb58   : > { %s2213_s30 = smov 128   ;;  %s2214_s8 = smov 24   ;;  %v1400_v31 = vpop.permute.xlu1 %1399  ;;  %vm1412_vm4 = vcmask 195584   ;;  %v1404_v15 = vpop.permute.xlu0 %1403  ;;  %vm1414_vm5 = vcmask 261120  }
 0xb59   : > { %1891 = dma.vmem_to_hbm [thread:$0]  (%p2295_p4), %s2714_s15, 512, %s2712_s19, %s2718_s20, %s2213_s30, %s2213_s30, %s2211_s21   ;;  %v1410_v55 = vsel %vm396_vm0, %v2560_v38, %v1400_v31 }
 0xb5a   : > { %s374_s11 = scalar_lea.vmem %s2779_s6, %s1589_s10  ;;  %v1411_v16 = vsel %vm542_vm2, %v1410_v55, %v1404_v15 }
 0xc17   : > { %v1394_v48 = vpop.f32.mrb[6].mxu0 }
 0xc18   : > { %1407 = vrot.lane.b32.xlu1 %v1394_v48, %s2214_s8  ;;  %v1734_v41 = vpop.f32.mrb[7].mxu0 }
 0xc8a   : > { %v1408_v17 = vpop.permute.xlu1 %1407 }
 0xc8b   : > { %v1413_v18 = vsel %vm1412_vm4, %v1411_v16, %v1408_v17 }
 0xc8c   : > { %1415 = vst.msk [vmem:[%s374_s11] sm:$0xff] %vm1414_vm5, %v1413_v18 }
 0xc8d PF: > { %p1897_p4 = scmp.ge.s32.totalorder %s2201_s29, 2  ;;  %s1466_s21 = sand.u32 1, %s2181_s24  }
 0xc8e   : > { %s1467_s17 = scalar_lea.sflag [#allocation3], %s1466_s21 }
 0xc8f   : > { %p1894_p2 = pnand %p1897_p4, %p2302_p8 }
 0xc91   : > { %2176 = dma.done.wait (!%p1894_p2), %s1467_s17, 512  }
 0xc92   : > { %2178 = vsyncadd (!%p1894_p2), %s1467_s17, 4294966784  ;;  %s21_s29 = sadd.s32 1, %s2201_s29   ;;  %s2785_s24 = smov %s2185_s25 }
 0xc93   : > { %p18_p3 = scmp.ge.s32.totalorder %s21_s29, 4   ;;  %s2786_s25 = smov %s2189_s26 }
 0xc94   : > { %s2787_s26 = smov %s2308_s14  ;;  %s2788_s27 = smov %s2197_s28 }
 0xc95   : > { %s2789_s28 = smov %s2791_s9  ;;  %20 = sbr.rel (!%p18_p3) target bundleno = 4 (0x4), region = 103 }
 0xc9c   :  { %1472 = vsyncpa [#allocation3], 1 }
 0xc9d   :  { %1474 = vsyncpa [#allocation3 + $0x1], 1 }

</bundles_post_ra>
